<compile_context>
chip_gen: v6e
topology: v6e:2x2x1
jax: 0.10.0
libtpu: 0.0.40
codegen_flags: <defaults>
</compile_context>

<pallas_src>
import functools

import jax
import jax.numpy as jnp
import numpy as np
from jax.experimental import pallas as pl
from jax.experimental.pallas import tpu as pltpu

BN_EPS = 1e-5
CHUNK = 128          # vocab chunk: sublanes of the one-hot, lanes of the table


def linear_layer_kernel(tokens_ref, price_ref, tbl_ref, scal_ref, out_ref, *,
                        segments, seq_len, tag_row_start, tag_col_start):
    """One batch block.

    tokens_ref : (L+2, B_BLK) int32        ids offset into concatenated vocab
    price_ref  : (1, B_BLK)   float32
    tbl_ref    : (n_chunks, 8, CHUNK) f32  row 0 = user|item emb, row 1 = tag emb
    scal_ref   : (3,) float32 SMEM         [a, b, bias] of folded BN+dense affine
    out_ref    : (1, B_BLK)   float32
    """
    _, bb = tokens_ref.shape

    # Hoisted SMEM scalar reads - keep them off the vector critical path.
    a = scal_ref[0]
    b = scal_ref[1]
    bias = scal_ref[2]

    # Single (CHUNK, 1) sublane iota, reused (plus a column offset) per chunk.
    iota0 = jax.lax.broadcasted_iota(jnp.int32, (CHUNK, 1), 0)

    # p[0] accumulates user+item embeddings, p[1] the tag-embedding sums.
    p = jnp.zeros((8, bb), jnp.float32)

    # Segment-scoped, vocab-chunked one-hot matmuls.
    for (row_start, n_rows, chunk_start, n_chunks) in segments:
        # This segment's token rows, loaded once (outside the chunk loop).
        rows = [tokens_ref[pl.ds(row_start + r, 1), :] for r in range(n_rows)]

        def chunk_body(c, acc, rows=rows, chunk_start=chunk_start):
            g = chunk_start + c                      # global chunk index
            ids = iota0 + g * CHUNK                  # (CHUNK, 1) global ids
            m = (ids == rows[0]).astype(jnp.float32)  # (CHUNK, B_BLK)
            for row in rows[1:]:
                m = m + (ids == row).astype(jnp.float32)
            return acc + jnp.dot(tbl_ref[g], m,
                                 preferred_element_type=jnp.float32)

        if n_chunks == 1:
            p = chunk_body(0, p)
        else:
            p = jax.lax.fori_loop(0, n_chunks, chunk_body, p)

    ui_sum = p[0:1, :]                   # user_e + item_e
    tag_sum = p[1:2, :]                  # sum of tag-sequence embeddings

    # Mean-pool length = #(tag id > 0), straight from the L tag rows.
    length = jnp.zeros((1, bb), jnp.float32)
    for r in range(seq_len):
        length = length + (tokens_ref[pl.ds(tag_row_start + r, 1), :]
                           > tag_col_start).astype(jnp.float32)
    # approx=False keeps the 1e-5 tolerance; EUP approx is an optional micro.
    inv_len = pl.reciprocal(jnp.maximum(length, 1.0), approx=False)
    tag_e = tag_sum * inv_len

    # float field: BatchNorm1d(1) + Linear(1,1,bias=False) folded into a*x + b.
    dense_e = price_ref[...] * a + b

    out_ref[...] = ui_sum + tag_e + dense_e + bias


def _round_up(x, m):
    return ((x + m - 1) // m) * m


def linear_layer(user_ids, item_ids, tag_ids, price, params, *, b_blk=256):
    B = user_ids.shape[0]
    L = tag_ids.shape[1]
    vu = params["user_tbl"].shape[0]
    vi = params["item_tbl"].shape[0]
    vt = params["tag_tbl"].shape[0]

    # Concatenated vocabulary; each segment padded to a CHUNK multiple so a
    # chunk never straddles two fields (keeps per-chunk compares segment-scoped
    # and all slices tile-aligned).
    vu_pad, vi_pad, vt_pad = (_round_up(v, CHUNK) for v in (vu, vi, vt))
    off_i = vu_pad
    off_t = vu_pad + vi_pad
    vtot_pad = off_t + vt_pad
    n_chunks = vtot_pad // CHUNK

    # (token_row_start, n_token_rows, first_chunk, n_chunks) per field.
    segments = (
        (0, 1, 0, vu_pad // CHUNK),                  # user
        (1, 1, off_i // CHUNK, vi_pad // CHUNK),     # item
        (2, L, off_t // CHUNK, vt_pad // CHUNK),     # tag sequence
    )

    # Token matrix (L+2, B): batch on lanes, ids offset into [user|item|tag].
    tokens = jnp.concatenate([
        user_ids.reshape(1, B).astype(jnp.int32),
        item_ids.reshape(1, B).astype(jnp.int32) + off_i,
        tag_ids.T.astype(jnp.int32) + off_t,
    ], axis=0)                                       # (L + 2, B)

    # Table: row 0 = user+item embeddings, row 1 = tag embeddings (8 rows for
    # f32 sublane alignment), reshaped into per-chunk slabs (n_chunks, 8, CHUNK)
    # so the kernel indexes chunks on the leading axis.
    # Relies on nn.Embedding(padding_idx=0) rows being exactly zero.
    row0 = (jnp.zeros((vtot_pad,), jnp.float32)
            .at[0:vu].set(params["user_tbl"][:, 0].astype(jnp.float32))
            .at[off_i:off_i + vi].set(params["item_tbl"][:, 0].astype(jnp.float32)))
    row1 = (jnp.zeros((vtot_pad,), jnp.float32)
            .at[off_t:off_t + vt].set(params["tag_tbl"][:, 0].astype(jnp.float32)))
    tbl = jnp.zeros((8, vtot_pad), jnp.float32).at[0].set(row0).at[1].set(row1)
    tbl = jnp.transpose(tbl.reshape(8, n_chunks, CHUNK), (1, 0, 2))

    # float field: training-mode BN stats over the FULL (unpadded) batch,
    # folded with the dense weight into a*x + b (the kernel is gridded over
    # batch, so per-block statistics would be wrong).
    x = price.reshape(-1).astype(jnp.float32)
    mean = jnp.mean(x)
    var = jnp.mean((x - mean) ** 2)
    scale = params["bn_gamma"][0, 0] * jax.lax.rsqrt(var + BN_EPS)
    a = params["w_dense"][0, 0] * scale
    b = params["w_dense"][0, 0] * (params["bn_beta"][0, 0] - mean * scale)
    scalars = jnp.stack([a, b, params["bias"][0, 0]]).astype(jnp.float32)

    # Batch block: always a multiple of 128 (lane-dense, unmasked stores) and
    # sized so the grid has >= 2 steps whenever B > 128 (v7x has 2 TCs).
    b128 = _round_up(B, 128)
    blk = max(128, min(_round_up(b_blk, 128), _round_up((b128 + 1) // 2, 128)))
    b_pad = _round_up(B, blk)
    if b_pad != B:
        tokens = jnp.pad(tokens, ((0, 0), (0, b_pad - B)))
        x = jnp.pad(x, (0, b_pad - B))
    price_in = x.reshape(1, b_pad)

    kernel = functools.partial(
        linear_layer_kernel, segments=segments, seq_len=L,
        tag_row_start=2, tag_col_start=off_t)

    out = pl.pallas_call(
        kernel,
        out_shape=jax.ShapeDtypeStruct((1, b_pad), jnp.float32),
        grid=(b_pad // blk,),
        in_specs=[
            pl.BlockSpec((L + 2, blk), lambda i: (0, i)),             # tokens
            pl.BlockSpec((1, blk), lambda i: (0, i)),                 # price
            pl.BlockSpec((n_chunks, 8, CHUNK), lambda i: (0, 0, 0)),  # table (resident)
            pl.BlockSpec(memory_space=pltpu.MemorySpace.SMEM),        # scalars
        ],
        out_specs=pl.BlockSpec((1, blk), lambda i: (0, i)),
        compiler_params=pltpu.CompilerParams(
            dimension_semantics=("parallel",)),
    )(tokens, price_in, tbl, scalars)
    return out[0, :B]                      # (B,)


def reference(user_ids, item_ids, tag_ids, price, params):
    # Pure-JAX reference of the PyTorch forward, for correctness checking.
    user_e = params["user_tbl"][user_ids, 0]
    item_e = params["item_tbl"][item_ids, 0]
    tag_seq = params["tag_tbl"][tag_ids, 0]                  # (B, L)
    length = jnp.sum((tag_ids > 0).astype(jnp.float32), axis=-1)
    tag_e = jnp.sum(tag_seq, axis=-1) / length
    x = price.reshape(-1, 1)
    mean = jnp.mean(x)
    var = jnp.mean((x - mean) ** 2)
    xn = (x - mean) / jnp.sqrt(var + BN_EPS) * params["bn_gamma"][0, 0] \
         + params["bn_beta"][0, 0]
    dense_e = (xn * params["w_dense"][0, 0])[:, 0]
    return user_e + item_e + tag_e + dense_e + params["bias"][0, 0]


if __name__ == "__main__":
    B, L = 200, 8
    # V_ITEM > CHUNK so the multi-chunk (fori_loop) path is exercised too.
    V_USER, V_ITEM, V_TAG = 50, 300, 30

    key = jax.random.PRNGKey(0)
    k = jax.random.split(key, 8)

    user_ids = jax.random.randint(k[0], (B,), 0, V_USER, dtype=jnp.int32)
    item_ids = jax.random.randint(k[1], (B,), 0, V_ITEM, dtype=jnp.int32)
    tag_ids = jax.random.randint(k[2], (B, L), 0, V_TAG, dtype=jnp.int32)
    # guarantee at least one non-padding token per sequence
    tag_ids = tag_ids.at[:, 0].set(jnp.maximum(tag_ids[:, 0], 1))
    price = jax.random.normal(k[3], (B,), dtype=jnp.float32)

    # deterministic synthetic parameters; padding_idx=0 rows set to zero
    user_tbl = jax.random.normal(k[4], (V_USER, 1), dtype=jnp.float32).at[0].set(0.0)
    item_tbl = jax.random.normal(k[5], (V_ITEM, 1), dtype=jnp.float32).at[0].set(0.0)
    tag_tbl = jax.random.normal(k[6], (V_TAG, 1), dtype=jnp.float32).at[0].set(0.0)

    params = {
        "user_tbl": user_tbl,
        "item_tbl": item_tbl,
        "tag_tbl": tag_tbl,
        "w_dense": jax.random.normal(k[7], (1, 1), dtype=jnp.float32),
        "bn_gamma": jnp.ones((1, 1), dtype=jnp.float32),
        "bn_beta": jnp.zeros((1, 1), dtype=jnp.float32),
        "bias": jnp.zeros((1, 1), dtype=jnp.float32),        # LinearLayer bias=True
    }

    # default b_blk=256 -> blk=128 here, so the padded batch (256) runs a
    # 2-step "parallel" grid.
    out = linear_layer(user_ids, item_ids, tag_ids, price, params)
    out = jax.block_until_ready(out)

    ref = reference(user_ids, item_ids, tag_ids, price, params)
    np.testing.assert_allclose(np.asarray(out), np.asarray(ref),
                               rtol=1e-5, atol=1e-5)
    print("KERNEL_OK")
</pallas_src>

<mosaic_0001>
module attributes {stable_mosaic.version = 11 : i64} {
  func.func @linear_layer_kernel(%arg0: i32, %arg1: memref<10x128xi32, #tpu.memory_space<vmem>>, %arg2: memref<1x128xf32, #tpu.memory_space<vmem>>, %arg3: memref<5x8x128xf32, #tpu.memory_space<vmem>>, %arg4: memref<3xf32, #tpu.memory_space<smem>>, %arg5: memref<1x128xf32, #tpu.memory_space<vmem>>) attributes {dimension_semantics = [#tpu.dimension_semantics<parallel>], iteration_bounds = array<i64: 2>, scalar_prefetch = 0 : i64, scratch_operands = 0 : i64, tpu.core_type = #tpu.core_type<tc>, window_params = [{transform_indices = @transform_0, window_bounds = array<i64: 10, 128>}, {transform_indices = @transform_1, window_bounds = array<i64: 1, 128>}, {pipeline_mode = #tpu.pipeline_mode<synchronous>, transform_indices = @transform_2, window_bounds = array<i64: 5, 8, 128>}, {transform_indices = @transform_3, window_bounds = array<i64: 3>}, {transform_indices = @transform_4, window_bounds = array<i64: 1, 128>}]} {
    %c0 = arith.constant 0 : index
    %0 = memref.load %arg4[%c0] : memref<3xf32, #tpu.memory_space<smem>>
    %c1 = arith.constant 1 : index
    %1 = memref.load %arg4[%c1] : memref<3xf32, #tpu.memory_space<smem>>
    %c2 = arith.constant 2 : index
    %2 = memref.load %arg4[%c2] : memref<3xf32, #tpu.memory_space<smem>>
    %3 = tpu.iota {dimensions = array<i32: 0>} : vector<128x1xi32>
    %cst = arith.constant 0.000000e+00 : f32
    %4 = vector.broadcast %cst : f32 to vector<8x128xf32>
    %c0_0 = arith.constant 0 : index
    %c0_1 = arith.constant 0 : index
    %5 = vector.load %arg1[%c0_0, %c0_1] : memref<10x128xi32, #tpu.memory_space<vmem>>, vector<1x128xi32>
    %c0_i32 = arith.constant 0 : i32
    %6 = vector.broadcast %c0_i32 : i32 to vector<128x1xi32>
    %7 = arith.addi %3, %6 : vector<128x1xi32>
    %8 = vector.broadcast %7 : vector<128x1xi32> to vector<128x128xi32>
    %9 = vector.broadcast %5 : vector<1x128xi32> to vector<128x128xi32>
    %10 = arith.cmpi eq, %8, %9 : vector<128x128xi32>
    %11 = arith.extui %10 : vector<128x128xi1> to vector<128x128xi32>
    %12 = arith.sitofp %11 : vector<128x128xi32> to vector<128x128xf32>
    %c0_2 = arith.constant 0 : index
    %c0_3 = arith.constant 0 : index
    %c0_4 = arith.constant 0 : index
    %13 = vector.load %arg3[%c0_2, %c0_3, %c0_4] : memref<5x8x128xf32, #tpu.memory_space<vmem>>, vector<1x8x128xf32>
    %14 = vector.shape_cast %13 : vector<1x8x128xf32> to vector<8x128xf32>
    %cst_5 = arith.constant dense<0.000000e+00> : vector<8x128xf32>
    %15 = tpu.matmul %14, %12, %cst_5 {dimension_numbers = #tpu.dot_dimension_numbers<[1], [0], [0], [1], [0, 0, 1, 1], [], []>} : vector<8x128xf32>, vector<128x128xf32>, vector<8x128xf32> -> vector<8x128xf32>
    %16 = arith.addf %4, %15 : vector<8x128xf32>
    %c1_6 = arith.constant 1 : index
    %c0_7 = arith.constant 0 : index
    %17 = vector.load %arg1[%c1_6, %c0_7] : memref<10x128xi32, #tpu.memory_space<vmem>>, vector<1x128xi32>
    %c0_i32_8 = arith.constant 0 : i32
    %c3_i32 = arith.constant 3 : i32
    %18 = arith.addi %c0_i32_8, %c3_i32 : i32
    %c1_i32 = arith.constant 1 : i32
    %19 = scf.for %arg6 = %c0_i32_8 to %18 step %c1_i32 iter_args(%arg7 = %16) -> (vector<8x128xf32>)  : i32 {
      %c1_i32_53 = arith.constant 1 : i32
      %146 = arith.addi %c1_i32_53, %arg6 : i32
      %c128_i32 = arith.constant 128 : i32
      %147 = arith.muli %146, %c128_i32 : i32
      %148 = vector.broadcast %147 : i32 to vector<128x1xi32>
      %149 = arith.addi %3, %148 : vector<128x1xi32>
      %150 = vector.broadcast %149 : vector<128x1xi32> to vector<128x128xi32>
      %151 = vector.broadcast %17 : vector<1x128xi32> to vector<128x128xi32>
      %152 = arith.cmpi eq, %150, %151 : vector<128x128xi32>
      %153 = arith.extui %152 : vector<128x128xi1> to vector<128x128xi32>
      %154 = arith.sitofp %153 : vector<128x128xi32> to vector<128x128xf32>
      %155 = arith.index_cast %146 : i32 to index
      %c0_54 = arith.constant 0 : index
      %c0_55 = arith.constant 0 : index
      %156 = vector.load %arg3[%155, %c0_54, %c0_55] : memref<5x8x128xf32, #tpu.memory_space<vmem>>, vector<1x8x128xf32>
      %157 = vector.shape_cast %156 : vector<1x8x128xf32> to vector<8x128xf32>
      %cst_56 = arith.constant dense<0.000000e+00> : vector<8x128xf32>
      %158 = tpu.matmul %157, %154, %cst_56 {dimension_numbers = #tpu.dot_dimension_numbers<[1], [0], [0], [1], [0, 0, 1, 1], [], []>} : vector<8x128xf32>, vector<128x128xf32>, vector<8x128xf32> -> vector<8x128xf32>
      %159 = arith.addf %arg7, %158 : vector<8x128xf32>
      scf.yield %159 : vector<8x128xf32>
    }
    %c3_i32_9 = arith.constant 3 : i32
    %c2_10 = arith.constant 2 : index
    %c0_11 = arith.constant 0 : index
    %20 = vector.load %arg1[%c2_10, %c0_11] : memref<10x128xi32, #tpu.memory_space<vmem>>, vector<1x128xi32>
    %c3 = arith.constant 3 : index
    %c0_12 = arith.constant 0 : index
    %21 = vector.load %arg1[%c3, %c0_12] : memref<10x128xi32, #tpu.memory_space<vmem>>, vector<1x128xi32>
    %c4 = arith.constant 4 : index
    %c0_13 = arith.constant 0 : index
    %22 = vector.load %arg1[%c4, %c0_13] : memref<10x128xi32, #tpu.memory_space<vmem>>, vector<1x128xi32>
    %c5 = arith.constant 5 : index
    %c0_14 = arith.constant 0 : index
    %23 = vector.load %arg1[%c5, %c0_14] : memref<10x128xi32, #tpu.memory_space<vmem>>, vector<1x128xi32>
    %c6 = arith.constant 6 : index
    %c0_15 = arith.constant 0 : index
    %24 = vector.load %arg1[%c6, %c0_15] : memref<10x128xi32, #tpu.memory_space<vmem>>, vector<1x128xi32>
    %c7 = arith.constant 7 : index
    %c0_16 = arith.constant 0 : index
    %25 = vector.load %arg1[%c7, %c0_16] : memref<10x128xi32, #tpu.memory_space<vmem>>, vector<1x128xi32>
    %c8 = arith.constant 8 : index
    %c0_17 = arith.constant 0 : index
    %26 = vector.load %arg1[%c8, %c0_17] : memref<10x128xi32, #tpu.memory_space<vmem>>, vector<1x128xi32>
    %c9 = arith.constant 9 : index
    %c0_18 = arith.constant 0 : index
    %27 = vector.load %arg1[%c9, %c0_18] : memref<10x128xi32, #tpu.memory_space<vmem>>, vector<1x128xi32>
    %c512_i32 = arith.constant 512 : i32
    %28 = vector.broadcast %c512_i32 : i32 to vector<128x1xi32>
    %29 = arith.addi %3, %28 : vector<128x1xi32>
    %30 = vector.broadcast %29 : vector<128x1xi32> to vector<128x128xi32>
    %31 = vector.broadcast %20 : vector<1x128xi32> to vector<128x128xi32>
    %32 = arith.cmpi eq, %30, %31 : vector<128x128xi32>
    %33 = arith.extui %32 : vector<128x128xi1> to vector<128x128xi32>
    %34 = arith.sitofp %33 : vector<128x128xi32> to vector<128x128xf32>
    %35 = vector.broadcast %29 : vector<128x1xi32> to vector<128x128xi32>
    %36 = vector.broadcast %21 : vector<1x128xi32> to vector<128x128xi32>
    %37 = arith.cmpi eq, %35, %36 : vector<128x128xi32>
    %38 = arith.extui %37 : vector<128x128xi1> to vector<128x128xi32>
    %39 = arith.sitofp %38 : vector<128x128xi32> to vector<128x128xf32>
    %40 = arith.addf %34, %39 : vector<128x128xf32>
    %41 = vector.broadcast %29 : vector<128x1xi32> to vector<128x128xi32>
    %42 = vector.broadcast %22 : vector<1x128xi32> to vector<128x128xi32>
    %43 = arith.cmpi eq, %41, %42 : vector<128x128xi32>
    %44 = arith.extui %43 : vector<128x128xi1> to vector<128x128xi32>
    %45 = arith.sitofp %44 : vector<128x128xi32> to vector<128x128xf32>
    %46 = arith.addf %40, %45 : vector<128x128xf32>
    %47 = vector.broadcast %29 : vector<128x1xi32> to vector<128x128xi32>
    %48 = vector.broadcast %23 : vector<1x128xi32> to vector<128x128xi32>
    %49 = arith.cmpi eq, %47, %48 : vector<128x128xi32>
    %50 = arith.extui %49 : vector<128x128xi1> to vector<128x128xi32>
    %51 = arith.sitofp %50 : vector<128x128xi32> to vector<128x128xf32>
    %52 = arith.addf %46, %51 : vector<128x128xf32>
    %53 = vector.broadcast %29 : vector<128x1xi32> to vector<128x128xi32>
    %54 = vector.broadcast %24 : vector<1x128xi32> to vector<128x128xi32>
    %55 = arith.cmpi eq, %53, %54 : vector<128x128xi32>
    %56 = arith.extui %55 : vector<128x128xi1> to vector<128x128xi32>
    %57 = arith.sitofp %56 : vector<128x128xi32> to vector<128x128xf32>
    %58 = arith.addf %52, %57 : vector<128x128xf32>
    %59 = vector.broadcast %29 : vector<128x1xi32> to vector<128x128xi32>
    %60 = vector.broadcast %25 : vector<1x128xi32> to vector<128x128xi32>
    %61 = arith.cmpi eq, %59, %60 : vector<128x128xi32>
    %62 = arith.extui %61 : vector<128x128xi1> to vector<128x128xi32>
    %63 = arith.sitofp %62 : vector<128x128xi32> to vector<128x128xf32>
    %64 = arith.addf %58, %63 : vector<128x128xf32>
    %65 = vector.broadcast %29 : vector<128x1xi32> to vector<128x128xi32>
    %66 = vector.broadcast %26 : vector<1x128xi32> to vector<128x128xi32>
    %67 = arith.cmpi eq, %65, %66 : vector<128x128xi32>
    %68 = arith.extui %67 : vector<128x128xi1> to vector<128x128xi32>
    %69 = arith.sitofp %68 : vector<128x128xi32> to vector<128x128xf32>
    %70 = arith.addf %64, %69 : vector<128x128xf32>
    %71 = vector.broadcast %29 : vector<128x1xi32> to vector<128x128xi32>
    %72 = vector.broadcast %27 : vector<1x128xi32> to vector<128x128xi32>
    %73 = arith.cmpi eq, %71, %72 : vector<128x128xi32>
    %74 = arith.extui %73 : vector<128x128xi1> to vector<128x128xi32>
    %75 = arith.sitofp %74 : vector<128x128xi32> to vector<128x128xf32>
    %76 = arith.addf %70, %75 : vector<128x128xf32>
    %c4_19 = arith.constant 4 : index
    %c0_20 = arith.constant 0 : index
    %c0_21 = arith.constant 0 : index
    %77 = vector.load %arg3[%c4_19, %c0_20, %c0_21] : memref<5x8x128xf32, #tpu.memory_space<vmem>>, vector<1x8x128xf32>
    %78 = vector.shape_cast %77 : vector<1x8x128xf32> to vector<8x128xf32>
    %cst_22 = arith.constant dense<0.000000e+00> : vector<8x128xf32>
    %79 = tpu.matmul %78, %76, %cst_22 {dimension_numbers = #tpu.dot_dimension_numbers<[1], [0], [0], [1], [0, 0, 1, 1], [], []>} : vector<8x128xf32>, vector<128x128xf32>, vector<8x128xf32> -> vector<8x128xf32>
    %80 = arith.addf %19, %79 : vector<8x128xf32>
    %81 = vector.extract_strided_slice %80 {offsets = [0, 0], sizes = [1, 128], strides = [1, 1]} : vector<8x128xf32> to vector<1x128xf32>
    %82 = vector.extract_strided_slice %80 {offsets = [1, 0], sizes = [1, 128], strides = [1, 1]} : vector<8x128xf32> to vector<1x128xf32>
    %cst_23 = arith.constant 0.000000e+00 : f32
    %83 = vector.broadcast %cst_23 : f32 to vector<1x128xf32>
    %c2_24 = arith.constant 2 : index
    %c0_25 = arith.constant 0 : index
    %84 = vector.load %arg1[%c2_24, %c0_25] : memref<10x128xi32, #tpu.memory_space<vmem>>, vector<1x128xi32>
    %c512_i32_26 = arith.constant 512 : i32
    %85 = vector.broadcast %c512_i32_26 : i32 to vector<1x128xi32>
    %86 = arith.cmpi sgt, %84, %85 : vector<1x128xi32>
    %87 = arith.extui %86 : vector<1x128xi1> to vector<1x128xi32>
    %88 = arith.sitofp %87 : vector<1x128xi32> to vector<1x128xf32>
    %89 = arith.addf %83, %88 : vector<1x128xf32>
    %c3_27 = arith.constant 3 : index
    %c0_28 = arith.constant 0 : index
    %90 = vector.load %arg1[%c3_27, %c0_28] : memref<10x128xi32, #tpu.memory_space<vmem>>, vector<1x128xi32>
    %c512_i32_29 = arith.constant 512 : i32
    %91 = vector.broadcast %c512_i32_29 : i32 to vector<1x128xi32>
    %92 = arith.cmpi sgt, %90, %91 : vector<1x128xi32>
    %93 = arith.extui %92 : vector<1x128xi1> to vector<1x128xi32>
    %94 = arith.sitofp %93 : vector<1x128xi32> to vector<1x128xf32>
    %95 = arith.addf %89, %94 : vector<1x128xf32>
    %c4_30 = arith.constant 4 : index
    %c0_31 = arith.constant 0 : index
    %96 = vector.load %arg1[%c4_30, %c0_31] : memref<10x128xi32, #tpu.memory_space<vmem>>, vector<1x128xi32>
    %c512_i32_32 = arith.constant 512 : i32
    %97 = vector.broadcast %c512_i32_32 : i32 to vector<1x128xi32>
    %98 = arith.cmpi sgt, %96, %97 : vector<1x128xi32>
    %99 = arith.extui %98 : vector<1x128xi1> to vector<1x128xi32>
    %100 = arith.sitofp %99 : vector<1x128xi32> to vector<1x128xf32>
    %101 = arith.addf %95, %100 : vector<1x128xf32>
    %c5_33 = arith.constant 5 : index
    %c0_34 = arith.constant 0 : index
    %102 = vector.load %arg1[%c5_33, %c0_34] : memref<10x128xi32, #tpu.memory_space<vmem>>, vector<1x128xi32>
    %c512_i32_35 = arith.constant 512 : i32
    %103 = vector.broadcast %c512_i32_35 : i32 to vector<1x128xi32>
    %104 = arith.cmpi sgt, %102, %103 : vector<1x128xi32>
    %105 = arith.extui %104 : vector<1x128xi1> to vector<1x128xi32>
    %106 = arith.sitofp %105 : vector<1x128xi32> to vector<1x128xf32>
    %107 = arith.addf %101, %106 : vector<1x128xf32>
    %c6_36 = arith.constant 6 : index
    %c0_37 = arith.constant 0 : index
    %108 = vector.load %arg1[%c6_36, %c0_37] : memref<10x128xi32, #tpu.memory_space<vmem>>, vector<1x128xi32>
    %c512_i32_38 = arith.constant 512 : i32
    %109 = vector.broadcast %c512_i32_38 : i32 to vector<1x128xi32>
    %110 = arith.cmpi sgt, %108, %109 : vector<1x128xi32>
    %111 = arith.extui %110 : vector<1x128xi1> to vector<1x128xi32>
    %112 = arith.sitofp %111 : vector<1x128xi32> to vector<1x128xf32>
    %113 = arith.addf %107, %112 : vector<1x128xf32>
    %c7_39 = arith.constant 7 : index
    %c0_40 = arith.constant 0 : index
    %114 = vector.load %arg1[%c7_39, %c0_40] : memref<10x128xi32, #tpu.memory_space<vmem>>, vector<1x128xi32>
    %c512_i32_41 = arith.constant 512 : i32
    %115 = vector.broadcast %c512_i32_41 : i32 to vector<1x128xi32>
    %116 = arith.cmpi sgt, %114, %115 : vector<1x128xi32>
    %117 = arith.extui %116 : vector<1x128xi1> to vector<1x128xi32>
    %118 = arith.sitofp %117 : vector<1x128xi32> to vector<1x128xf32>
    %119 = arith.addf %113, %118 : vector<1x128xf32>
    %c8_42 = arith.constant 8 : index
    %c0_43 = arith.constant 0 : index
    %120 = vector.load %arg1[%c8_42, %c0_43] : memref<10x128xi32, #tpu.memory_space<vmem>>, vector<1x128xi32>
    %c512_i32_44 = arith.constant 512 : i32
    %121 = vector.broadcast %c512_i32_44 : i32 to vector<1x128xi32>
    %122 = arith.cmpi sgt, %120, %121 : vector<1x128xi32>
    %123 = arith.extui %122 : vector<1x128xi1> to vector<1x128xi32>
    %124 = arith.sitofp %123 : vector<1x128xi32> to vector<1x128xf32>
    %125 = arith.addf %119, %124 : vector<1x128xf32>
    %c9_45 = arith.constant 9 : index
    %c0_46 = arith.constant 0 : index
    %126 = vector.load %arg1[%c9_45, %c0_46] : memref<10x128xi32, #tpu.memory_space<vmem>>, vector<1x128xi32>
    %c512_i32_47 = arith.constant 512 : i32
    %127 = vector.broadcast %c512_i32_47 : i32 to vector<1x128xi32>
    %128 = arith.cmpi sgt, %126, %127 : vector<1x128xi32>
    %129 = arith.extui %128 : vector<1x128xi1> to vector<1x128xi32>
    %130 = arith.sitofp %129 : vector<1x128xi32> to vector<1x128xf32>
    %131 = arith.addf %125, %130 : vector<1x128xf32>
    %cst_48 = arith.constant 1.000000e+00 : f32
    %132 = vector.broadcast %cst_48 : f32 to vector<1x128xf32>
    %133 = arith.maximumf %131, %132 : vector<1x128xf32>
    %134 = tpu.reciprocal %133 : vector<1x128xf32> -> vector<1x128xf32>
    %135 = arith.mulf %82, %134 : vector<1x128xf32>
    %c0_49 = arith.constant 0 : index
    %c0_50 = arith.constant 0 : index
    %136 = vector.load %arg2[%c0_49, %c0_50] : memref<1x128xf32, #tpu.memory_space<vmem>>, vector<1x128xf32>
    %137 = vector.broadcast %0 : f32 to vector<1x128xf32>
    %138 = arith.mulf %136, %137 : vector<1x128xf32>
    %139 = vector.broadcast %1 : f32 to vector<1x128xf32>
    %140 = arith.addf %138, %139 : vector<1x128xf32>
    %141 = arith.addf %81, %135 : vector<1x128xf32>
    %142 = arith.addf %141, %140 : vector<1x128xf32>
    %143 = vector.broadcast %2 : f32 to vector<1x128xf32>
    %144 = arith.addf %142, %143 : vector<1x128xf32>
    %c0_51 = arith.constant 0 : index
    %c0_52 = arith.constant 0 : index
    %145 = vector.load %arg5[%c0_51, %c0_52] : memref<1x128xf32, #tpu.memory_space<vmem>>, vector<1x128xf32>
    tpu.vector_store %arg5[%c0_51, %c0_52], %144 {strides = array<i32>} : memref<1x128xf32, #tpu.memory_space<vmem>>, vector<1x128xf32>,
    return
  }
  func.func @transform_0(%arg0: i32) -> (i32, i32) {
    %c0_i32 = arith.constant 0 : i32
    %c0_i32_0 = arith.constant 0 : i32
    return %c0_i32, %arg0 : i32, i32
  }
  func.func @transform_1(%arg0: i32) -> (i32, i32) {
    %c0_i32 = arith.constant 0 : i32
    %c0_i32_0 = arith.constant 0 : i32
    return %c0_i32, %arg0 : i32, i32
  }
  func.func @transform_2(%arg0: i32) -> (i32, i32, i32) {
    %c0_i32 = arith.constant 0 : i32
    %c0_i32_0 = arith.constant 0 : i32
    %c0_i32_1 = arith.constant 0 : i32
    %c0_i32_2 = arith.constant 0 : i32
    return %c0_i32, %c0_i32_0, %c0_i32_1 : i32, i32, i32
  }
  func.func @transform_3(%arg0: i32) -> i32 {
    %c0_i32 = arith.constant 0 : i32
    %c0_i32_0 = arith.constant 0 : i32
    return %c0_i32 : i32
  }
  func.func @transform_4(%arg0: i32) -> (i32, i32) {
    %c0_i32 = arith.constant 0 : i32
    %c0_i32_0 = arith.constant 0 : i32
    return %c0_i32, %arg0 : i32, i32
  }
}

</mosaic_0001>

<bundles_post_ra>
// kernel: tpu_custom_call.1
= control target key start
LH: loop header
LB: loop body
LE: loop exit
PB: predicated region body
PF: predicated region fallthrough
CT: control target
= control target key end

     0   :  { %s2996_s0 = inlined_call_operand.hbm [shape: s32[10,256], index: 0, kind: input, shape index: {}]   ;;  %s2997_s1 = inlined_call_operand.hbm [shape: f32[1,256], index: 1, kind: input, shape index: {}]   ;;  %s2998_s2 = inlined_call_operand.hbm [shape: f32[5,8,128], index: 2, kind: input, shape index: {}]   ;;  %s2999_s3 = inlined_call_operand.vmem [shape: f32[3], index: 3, kind: input, shape index: {}]   ;;  %s3000_s4 = inlined_call_operand.hbm [shape: f32[1,256], index: 4, kind: output, shape index: {}]  }
   0x1   :  { %3005 = sst [smem:[#allocation16_spill]] %s2996_s0 }
   0x2   :  { %3006 = sst [smem:[#allocation17_spill]] %s2998_s2 }
   0x3   :  { %9 = vsyncpa [#allocation3], 0 }
   0x4   :  { %11 = vsyncpa [#allocation3 + $0x1], 0 }
   0x5   :  { %12 = vsyncpa [#allocation7], 0 }
   0x6   :  { %14 = vsyncpa [#allocation7 + $0x1], 0 }
   0x7   :  { %15 = vsyncpa [#allocation5], 0 }
   0x8   :  { %16 = vsyncpa [#allocation4], 0 }
   0x9   :  { %18 = vsyncpa [#allocation4 + $0x1], 0  ;;  %s2089_s15 = smov 0   ;;  %s2091_s16 = smov 0  }
   0xa   :  { %s2093_s17 = smov 0   ;;  %s2095_s18 = smov 0  }
   0xb LB: > { %s2110_s19 = sadd.s32 4294967295, %s2040_s18   ;;  %s1380_s20 = sadd.s32 4294967294, %s2040_s18   ;;  %s2040_s18 = sphi %s2095_s18, %s3030_s18   ;;  %s2036_s17 = sphi %s2093_s17, %s3029_s17   ;;  %s2032_s16 = sphi %s2091_s16, %s3028_s16   ;;  %s2028_s15 = sphi %s2089_s15, %s3027_s15  }
   0xc   : > { %s2114_s21 = sadd.s32 1, %s2040_s18   ;;  %s31_s22 = sadd.s32 1, %s2036_s17 }
   0xd   : > { %s28_s23 = ssub.s32 %s2040_s18, %s2114_s21  ;;  %p38_p0 = scmp.ne.s32.totalorder %s2036_s17, %s2032_s16 }
   0xe   : > { %p29_p1 = scmp.eq.s32.totalorder %s28_s23, 0  ;;  %p39_p2 = scmp.eq.s32.totalorder %s2040_s18, 0 }
   0xf   : > { %p44_p3 = scmp.ne.s32.totalorder %s2032_s16, %s2028_s15  ;;  %p3001_p4 = scmp.eq.s32.totalorder %s2110_s19, 0 }
  0x10   : > { %s2126_s24 = scalar_select %p29_p1, %s2036_s17, %s31_s22  }
  0x11   : > { %p2128_p5 = por %p39_p2, %p38_p0  ;;  %p2134_p6 = por %p3001_p4, %p44_p3 }
  0x12   : > { %p136_p7 = scmp.eq.s32.totalorder %s2110_s19, 1  ;;  %p142_p8 = scmp.eq.s32.totalorder %s1380_s20, 1 }
  0x13   : > { %s3008_s26 = scalar_select %p2134_p6, 1, 0 }
  0x14   : > { %p1381_p9 = scmp.ge.s32.totalorder %s2040_s18, 1  ;;  %p149_p10 = scmp.lt.s32.totalorder %s2040_s18, 3 }
  0x15   : > { %p2141_p11 = por %p136_p7, %p38_p0  ;;  %p2145_p12 = por %p142_p8, %p44_p3 }
  0x16   : > { %p2149_p13 = pnand %p1381_p9, %p149_p10  ;;  %s2050_s30 = smov [#allocation8]  }
  0x17   : > { %s3009_s27 = scalar_select %p2141_p11, 1, 0 }
  0x18   : > { %s3010_s28 = scalar_select %p2145_p12, 1, 0 }
  0x19   : > { %s3011_s29 = scalar_select %p2149_p13, 1, 0 }
  0x1a   : > { %p1774_p1 = pneg %p2149_p13  ;;  %s161_s5 = sshll.u32 %s2050_s30, 4  ;;  %s162_s5 = int_to_ptr.vmem [resolvable:$true] %s161_s5 }
  0x1b   : > { %p1794_p3 = scmp.lt.s32.totalorder %s2040_s18, 2  ;;  %s175_s9 = sshll.u32 %s2999_s3, 4  ;;  %s176_s9 = int_to_ptr.vmem [resolvable:$true] %s175_s9 }
  0x1c   : > { %p2157_p2 = pnand %p1774_p1, %p3001_p4  ;;  %s1870_s10 = scalar_lea.vmem %s162_s5, 640 }
  0x1d   : > { %p1871_p8 = scmp.ne.s32.totalorder %s162_s5, %s1870_s10  ;;  %p1878_p1 = scmp.lt.s32.totalorder %s162_s5, %s162_s5 }
  0x1e   : > { %p1861_p7 = pneg %p2157_p2  ;;  %p1879_p4 = scmp.lt.s32.totalorder %s1870_s10, %s1870_s10 }
  0x20   : > { %p1873_p9 = pnand %p1871_p8, %p1861_p7  ;;  %p1880_p12 = por %p1879_p4, %p1878_p1 }
  0x22   : > { %p1874_p10 = pneg %p1873_p9 }
  0x24   : > { %p1881_p11 = pnand %p1880_p12, %p1874_p10 }
  0x26   : > { %1884 = shalt.err (!%p1881_p11)
}
  0x27   : > { %s2051_s11 = smov 128   ;;  %s2052_s12 = smov 8  }
  0x28   : > { %s3013_s2 = sld [smem:[#allocation17_spill]]  ;;  %p2183_p8 = pnand %p1794_p3, %p2128_p5 }
  0x29   : > { %s1885_s22 = scalar_lea.vmem %s176_s9, 16  ;;  %p1893_p9 = scmp.lt.s32.totalorder %s176_s9, %s176_s9 }
  0x2a   : > { %p1886_p4 = scmp.ne.s32.totalorder %s176_s9, %s1885_s22  ;;  %p1894_p10 = scmp.lt.s32.totalorder %s1885_s22, %s1885_s22 }
  0x2c   : > { %p1888_p11 = pnand %p1886_p4, %p1861_p7  ;;  %p1895_p1 = por %p1894_p10, %p1893_p9 }
  0x2e   : > { %1777 = dma.hbm_to_vmem [thread:$0]  (!%p2157_p2), %s3013_s2, 640, %s162_s5, [#allocation7], %s2051_s11, %s2051_s11, %s2052_s12  }
  0x2f   : > { %p1889_p12 = pneg %p1888_p11 }
  0x31   : > { %p1896_p0 = pnand %p1895_p1, %p1889_p12 }
  0x33   : > { %1899 = shalt.err (!%p1896_p0)
}
  0x34   : > { %s2053_s23 = smov [#allocation9]   ;;  %s2193_s25 = sand.u32 1, %s2036_s17  }
  0x35   : > { %1780 = dma.vmem_to_smem (!%p2157_p2), %s176_s9, 16, %s2053_s23, [#allocation5]  }
  0x36   : > { %s1385_s30 = sshll.u32 %s2193_s25, 4  ;;  %s1386_s5 = sshll.u32 %s2040_s18, 7 }
  0x37   : > { %s3015_s0 = sld [smem:[#allocation16_spill]]  ;;  %s190_s6 = scalar_lea.vmem [#allocation2], %s1385_s30 }
  0x38   : > { %s196_s13 = sshll.u32 %s190_s6, 4  ;;  %s187_s14 = scalar_lea.sflag [#allocation3], %s2193_s25  ;;  %s2202_s13 = int_to_ptr.vmem [resolvable:$true] %s196_s13 }
  0x39   : > { %p1902_p2 = pneg %p2183_p8 }
  0x3d   : > { %s2200_s10 = scalar_lea.hbm %s3015_s0, %s1386_s5  ;;  %s1905_s5 = scalar_lea.hbm %s3015_s0, 512 }
  0x3e   : > { %s1900_s9 = scalar_lea.hbm %s2200_s10, 256  ;;  %p1906_p7 = scmp.lt.s32.totalorder %s2200_s10, %s3015_s0 }
  0x3f   : > { %p1901_p5 = scmp.ne.s32.totalorder %s2200_s10, %s1900_s9  ;;  %p1907_p4 = scmp.lt.s32.totalorder %s1905_s5, %s1900_s9 }
  0x41   : > { %p1903_p0 = pnand %p1902_p2, %p1901_p5  ;;  %p1908_p11 = por %p1907_p4, %p1906_p7 }
  0x43   : > { %p1904_p3 = pneg %p1903_p0 }
  0x45   : > { %p1909_p12 = pnand %p1908_p11, %p1904_p3 }
  0x47   : > { %1912 = shalt.err (!%p1909_p12)
}
  0x48   : > { %s1913_s30 = scalar_lea.vmem %s2202_s13, 256  ;;  %s2054_s6 = smov [#allocation2]  }
  0x49   : > { %p1914_p9 = scmp.ne.s32.totalorder %s2202_s13, %s1913_s30  ;;  %s1918_s22 = sshll.u32 %s2054_s6, 4  ;;  %s1919_s22 = int_to_ptr.vmem [resolvable:$false] %s1918_s22 }
  0x4a   : > { %s1920_s23 = scalar_lea.vmem %s1919_s22, 512  ;;  %p1921_p5 = scmp.lt.s32.totalorder %s2202_s13, %s1919_s22 }
  0x4b   : > { %p1916_p10 = pnand %p1914_p9, %p1902_p2  ;;  %p1922_p0 = scmp.lt.s32.totalorder %s1920_s23, %s1913_s30 }
  0x4d   : > { %p1917_p1 = pneg %p1916_p10  ;;  %p1923_p6 = por %p1922_p0, %p1921_p5 }
  0x4f   : > { %p1924_p7 = pnand %p1923_p6, %p1917_p1 }
  0x51   : > { %1927 = shalt.err (!%p1924_p7)
}
  0x52   : > { %s2055_s9 = smov 256   ;;  %s206_s5 = sand.u32 1, %s2040_s18  }
  0x53   : > { %1784 = dma.hbm_to_vmem [thread:$0]  (!%p2183_p8), %s2200_s10, 256, %s2202_s13, %s187_s14, %s2055_s9, %s2051_s11, %s2052_s12  }
  0x54   : > { %s1387_s7 = sshll.u32 %s2040_s18, 4  ;;  %s209_s22 = scalar_lea.vmem [#allocation6], %s2193_s25 }
  0x55   : > { %s2238_s6 = scalar_lea.hbm %s2997_s1, %s1387_s7  ;;  %s216_s23 = sshll.u32 %s209_s22, 4  ;;  %s217_s23 = int_to_ptr.vmem [resolvable:$true] %s216_s23 }
  0x56   : > { %s207_s0 = scalar_lea.sflag [#allocation7], %s206_s5  ;;  %s1928_s2 = scalar_lea.hbm %s2238_s6, 16 }
  0x57   : > { %p1929_p6 = scmp.ne.s32.totalorder %s2238_s6, %s1928_s2  ;;  %s1933_s10 = scalar_lea.hbm %s2997_s1, 32 }
  0x58   : > { %p1934_p11 = scmp.lt.s32.totalorder %s2238_s6, %s2997_s1  ;;  %p1935_p12 = scmp.lt.s32.totalorder %s1933_s10, %s1928_s2 }
  0x59   : > { %p1931_p3 = pnand %p1929_p6, %p1902_p2 }
  0x5a   : > { %p1936_p9 = por %p1935_p12, %p1934_p11 }
  0x5b   : > { %p1932_p4 = pneg %p1931_p3 }
  0x5d   : > { %p1937_p10 = pnand %p1936_p9, %p1932_p4 }
  0x5f   : > { %1940 = shalt.err (!%p1937_p10)
}
  0x60   : > { %s1941_s25 = scalar_lea.vmem %s217_s23, 16  ;;  %s2056_s9 = smov [#allocation6]  }
  0x61   : > { %p1942_p1 = scmp.ne.s32.totalorder %s217_s23, %s1941_s25  ;;  %s1946_s5 = sshll.u32 %s2056_s9, 4  ;;  %s1947_s5 = int_to_ptr.vmem [resolvable:$false] %s1946_s5 }
  0x62   : > { %s1948_s7 = scalar_lea.vmem %s1947_s5, 32  ;;  %p1949_p7 = scmp.lt.s32.totalorder %s217_s23, %s1947_s5 }
  0x63   : > { %p1944_p5 = pnand %p1942_p1, %p1902_p2  ;;  %p1950_p6 = scmp.lt.s32.totalorder %s1948_s7, %s1941_s25 }
  0x65   : > { %p1945_p0 = pneg %p1944_p5  ;;  %p1951_p3 = por %p1950_p6, %p1949_p7 }
  0x67   : > { %p1952_p13 = pnand %p1951_p3, %p1945_p0 }
  0x69   : > { %1955 = shalt.err (!%p1952_p13)
}
  0x6a   : > { %1787 = dma.hbm_to_vmem [thread:$0]  (!%p2183_p8), %s2238_s6, 16, %s217_s23, %s207_s0  }
  0x6b   : > { %p3016_p4 = scmp.ne.s32.totalorder %s3011_s29, 0 }
  0x6c   : > { %s2262_s2 = sand.u32 (!%p3016_p4), 1, %s2032_s16   ;;  %p3017_p2 = scmp.ne.s32.totalorder (!%p3016_p4), %s3008_s26, 0 }
  0x6d   : > { %225 = sbr.rel (%p3016_p4) target bundleno = 899 (0x383), region = 36  ;;  %s1389_s8 = sshll.u32 (!%p3016_p4), %s2262_s2, 4 }
  0x6e   : > { %s228_s30 = scalar_lea.sflag (!%p3016_p4), [#allocation3], %s2262_s2  ;;  %s2266_s22 = scalar_lea.vmem (!%p3016_p4), [#allocation2], %s1389_s8 }
  0x72   : > { %2007 = dma.done.wait (%p3017_p2), %s228_s30, 256  }
  0x73   : > { %2009 = vsyncadd (%p3017_p2), %s228_s30, 4294967040  ;;  %s236_s0 = sand.u32 1, %s2110_s19   ;;  %s239_s20 = scalar_lea.vmem [#allocation6], %s2262_s2 }
  0x74   : > { %s237_s29 = scalar_lea.sflag [#allocation7], %s236_s0 }
  0x75   : > { %2011 = dma.done.wait (%p3017_p2), %s237_s29, 16  }
  0x76   : > { %2013 = vsyncadd (%p3017_p2), %s237_s29, 4294967280  ;;  %p3018_p13 = scmp.eq.s32.totalorder %s2110_s19, 0 }
  0x78   : > { %2015 = dma.done.wait (%p3018_p13), [#allocation7], 640   ;;  %p3019_p8 = pmov %p3018_p13 }
  0x7a   : > { %2017 = vsyncadd (%p3019_p8), [#allocation7], 4294966656  ;;  %p3020_p11 = pmov %p3019_p8 }
  0x7b   : > { %p3021_p12 = pmov %p3019_p8 }
  0x7c   : > { %2019 = dma.done.wait (%p3020_p11), [#allocation5], 16  }
  0x7d   : > { %2021 = vsyncadd (%p3021_p12), [#allocation5], 4294967280 }
  0x7e   : > { %252 = sfence }
  0x7f   : > { %s2286_s6 = sld [smem:[#allocation9]]  ;;  %v279_v0 = vlaneseq  ;;  %v2057_v1 = vmov 0.0   ;;  %vm2058_vm0 = vmmov 0   ;;  %v2298_v3 = vld [vmem:[%s2266_s22] ss:$0 sm:$0xff]  ;;  %v2059_v8 = vmov 1.0  }
  0x80   : > { %s2288_s23 = sld [smem:[#allocation9 + $0x1]]  ;;  %1655 = vmatprep.subr.mxu0 %v2057_v1  ;;  %1687 = vmatprep.mubr.msk.f32.mxu0 %vm2058_vm0, %v2057_v1  ;;  %v349_v20 = vld [vmem:[#allocation8] sm:$0xff]  ;;  %v2393_v21 = vld [vmem:[%s2266_s22 + $0x1] ss:$0 sm:$0xff]  ;;  %s275_s11 = scalar_lea.vmem [#allocation10], %s2262_s2 }
  0x81   : > { %s2291_s26 = sld [smem:[#allocation9 + $0x2]]  ;;  %v2293_v2 = vshrl.u32 %v279_v0, 7  ;;  %s2398_s12 = smov 0  }
  0x83   : > { %v2301_v4 = vadd.s32 120, %v2293_v2  ;;  %v2304_v5 = vadd.s32 112, %v2293_v2  ;;  %v2307_v6 = vadd.s32 104, %v2293_v2  ;;  %v2314_v7 = vadd.s32 96, %v2293_v2 }
  0x84   : > { %v2320_v9 = vadd.s32 88, %v2293_v2  ;;  %v2326_v10 = vadd.s32 80, %v2293_v2  ;;  %v2332_v11 = vadd.s32 72, %v2293_v2  ;;  %v2338_v12 = vadd.s32 64, %v2293_v2 }
  0x85   : > { %vm316_vm1 = vcmp.eq.s32.totalorder %v2301_v4, %v2298_v3  ;;  %vm315_vm2 = vcmp.eq.s32.totalorder %v2304_v5, %v2298_v3  ;;  %vm314_vm3 = vcmp.eq.s32.totalorder %v2307_v6, %v2298_v3  ;;  %vm313_vm4 = vcmp.eq.s32.totalorder %v2314_v7, %v2298_v3 }
  0x86   : > { %1656 = vmatpush3.msk.msra.mxu0 %vm316_vm1, %v2059_v8  ;;  %vm312_vm5 = vcmp.eq.s32.totalorder %v2320_v9, %v2298_v3  ;;  %vm311_vm6 = vcmp.eq.s32.totalorder %v2326_v10, %v2298_v3  ;;  %vm310_vm7 = vcmp.eq.s32.totalorder %v2332_v11, %v2298_v3  ;;  %v2344_v13 = vadd.s32 56, %v2293_v2 }
  0x87   : > { %1657 = vmatprep.subr.mxu0 %v2057_v1  ;;  %vm309_vm8 = vcmp.eq.s32.totalorder %v2338_v12, %v2298_v3  ;;  %v2350_v14 = vadd.s32 48, %v2293_v2  ;;  %v2356_v15 = vadd.s32 40, %v2293_v2  ;;  %v2362_v16 = vadd.s32 32, %v2293_v2 }
  0x88   : > { %1658 = vmatpush3.msk.msra.mxu0 %vm315_vm2, %v2059_v8  ;;  %vm308_vm9 = vcmp.eq.s32.totalorder %v2344_v13, %v2298_v3  ;;  %v2368_v17 = vadd.s32 24, %v2293_v2  ;;  %v2374_v18 = vadd.s32 16, %v2293_v2  ;;  %v2380_v19 = vadd.s32 8, %v2293_v2 }
  0x89   : > { %1659 = vmatprep.subr.mxu0 %v2057_v1  ;;  %vm307_vm10 = vcmp.eq.s32.totalorder %v2350_v14, %v2298_v3  ;;  %vm306_vm11 = vcmp.eq.s32.totalorder %v2356_v15, %v2298_v3  ;;  %vm305_vm12 = vcmp.eq.s32.totalorder %v2362_v16, %v2298_v3  ;;  %vm301_vm1 = vcmp.eq.s32.totalorder %v2293_v2, %v2298_v3 }
  0x8a   : > { %1660 = vmatpush3.msk.msra.mxu0 %vm314_vm3, %v2059_v8  ;;  %vm304_vm13 = vcmp.eq.s32.totalorder %v2368_v17, %v2298_v3  ;;  %vm303_vm14 = vcmp.eq.s32.totalorder %v2374_v18, %v2298_v3  ;;  %vm302_vm15 = vcmp.eq.s32.totalorder %v2380_v19, %v2298_v3 }
  0x8b   : > { %1661 = vmatprep.subr.mxu0 %v2057_v1 }
  0x8c   : > { %1662 = vmatpush3.msk.msra.mxu0 %vm313_vm4, %v2059_v8 }
  0x8d   : > { %1663 = vmatprep.subr.mxu0 %v2057_v1 }
  0x8e   : > { %1664 = vmatpush3.msk.msra.mxu0 %vm312_vm5, %v2059_v8 }
  0x8f   : > { %1665 = vmatprep.subr.mxu0 %v2057_v1 }
  0x90   : > { %1666 = vmatpush3.msk.msra.mxu0 %vm311_vm6, %v2059_v8 }
  0x91   : > { %1667 = vmatprep.subr.mxu0 %v2057_v1 }
  0x92   : > { %1668 = vmatpush3.msk.msra.mxu0 %vm310_vm7, %v2059_v8 }
  0x93   : > { %1669 = vmatprep.subr.mxu0 %v2057_v1 }
  0x94   : > { %1670 = vmatpush3.msk.msra.mxu0 %vm309_vm8, %v2059_v8 }
  0x95   : > { %1671 = vmatprep.subr.mxu0 %v2057_v1 }
  0x96   : > { %1672 = vmatpush3.msk.msra.mxu0 %vm308_vm9, %v2059_v8 }
  0x97   : > { %1673 = vmatprep.subr.mxu0 %v2057_v1 }
  0x98   : > { %1674 = vmatpush3.msk.msra.mxu0 %vm307_vm10, %v2059_v8 }
  0x99   : > { %1675 = vmatprep.subr.mxu0 %v2057_v1 }
  0x9a   : > { %1676 = vmatpush3.msk.msra.mxu0 %vm306_vm11, %v2059_v8 }
  0x9b   : > { %1677 = vmatprep.subr.mxu0 %v2057_v1 }
  0x9c   : > { %1678 = vmatpush3.msk.msra.mxu0 %vm305_vm12, %v2059_v8 }
  0x9d   : > { %1679 = vmatprep.subr.mxu0 %v2057_v1 }
  0x9e   : > { %1680 = vmatpush3.msk.msra.mxu0 %vm304_vm13, %v2059_v8 }
  0x9f   : > { %1681 = vmatprep.subr.mxu0 %v2057_v1 }
  0xa0   : > { %1682 = vmatpush3.msk.msra.mxu0 %vm303_vm14, %v2059_v8 }
  0xa1   : > { %1683 = vmatprep.subr.mxu0 %v2057_v1 }
  0xa2   : > { %1684 = vmatpush3.msk.msra.mxu0 %vm302_vm15, %v2059_v8 }
  0xa3   : > { %1685 = vmatprep.subr.mxu0 %v2057_v1 }
  0xa4   : > { %1686 = vmatpush3.msk.msra.mxu0 %vm301_vm1, %v2059_v8 }
  0xa5   : > { %1688 = vmatmul.mubr.f32.vlgmr.msra.gmra.mxu0 %v349_v20 }
 0x165   : > { %v416_v22 = vpop.f32.mrf.mxu0  }
 0x167   : > { %v1689_v23 = vpop.f32.mrf.mxu0 }
 0x168 LB: >> { %v2060_v24 = vmov 0.0   ;;  %vm2061_vm2 = vmmov 0   ;;  %s1602_s10 = sshll.u32 %s2048_s12, 7  ;;  %v2062_v30 = vmov 1.0   ;;  %s1445_s14 = sshll.u32 %s2048_s12, 3  ;;  %s2048_s12 = sphi %s2398_s12, %s426_s12   ;;  %v2044_v22 = vphi %v416_v22, %v3023_v22  }
 0x169   : >> { %1690 = vmatprep.subr.mxu0 %v2060_v24  ;;  %1722 = vmatprep.mubr.msk.f32.mxu0 %vm2061_vm2, %v2060_v24  ;;  %s1603_s13 = sadd.s32 128, %s1602_s10  ;;  %s1313_s25 = scalar_lea.vmem [#allocation8], %s1445_s14 }
 0x16a   : >> { %v430_v25 = vstv %s1603_s13  ;;  %v1446_v43 = vld [vmem:[%s1313_s25 + $0x8] sm:$0xff]  ;;  %s426_s12 = sadd.s32 1, %s2048_s12  }
 0x16b   : >> { %v446_v26 = vadd.s32 %v430_v25, %v2301_v4  ;;  %v445_v27 = vadd.s32 %v430_v25, %v2304_v5  ;;  %v444_v28 = vadd.s32 %v430_v25, %v2307_v6  ;;  %v443_v29 = vadd.s32 %v430_v25, %v2314_v7  ;;  %p423_p9 = scmp.ge.s32.totalorder %s426_s12, 3  }
 0x16c   : >> { %v442_v31 = vadd.s32 %v430_v25, %v2320_v9  ;;  %v441_v32 = vadd.s32 %v430_v25, %v2326_v10  ;;  %v440_v33 = vadd.s32 %v430_v25, %v2332_v11  ;;  %v439_v34 = vadd.s32 %v430_v25, %v2338_v12  ;;  %v2468_v47 = vld [vmem:[%s2266_s22 + $0x2] sm:$0x1] (%p423_p9)  ;;  %v2471_v48 = vld [vmem:[%s2266_s22 + $0x3] sm:$0x1] (%p423_p9)  ;;  %v2474_v49 = vld [vmem:[%s2266_s22 + $0x4] sm:$0x1] (%p423_p9) }
 0x16d   : >> { %vm466_vm3 = vcmp.eq.s32.totalorder %v446_v26, %v2393_v21  ;;  %vm465_vm4 = vcmp.eq.s32.totalorder %v445_v27, %v2393_v21  ;;  %vm464_vm5 = vcmp.eq.s32.totalorder %v444_v28, %v2393_v21  ;;  %vm463_vm6 = vcmp.eq.s32.totalorder %v443_v29, %v2393_v21  ;;  %v2479_v50 = vld [vmem:[%s2266_s22 + $0x5] sm:$0x1] (%p423_p9)  ;;  %v2482_v51 = vld [vmem:[%s2266_s22 + $0x6] sm:$0x1] (%p423_p9)  ;;  %v2485_v52 = vld [vmem:[%s2266_s22 + $0x7] sm:$0x1] (%p423_p9) }
 0x16e   : >> { %1691 = vmatpush3.msk.msra.mxu0 %vm466_vm3, %v2062_v30  ;;  %vm462_vm7 = vcmp.eq.s32.totalorder %v442_v31, %v2393_v21  ;;  %vm461_vm8 = vcmp.eq.s32.totalorder %v441_v32, %v2393_v21  ;;  %vm460_vm9 = vcmp.eq.s32.totalorder %v440_v33, %v2393_v21  ;;  %v438_v35 = vadd.s32 %v430_v25, %v2344_v13  ;;  %v2488_v53 = vld [vmem:[%s2266_s22 + $0x8] sm:$0x1] (%p423_p9)  ;;  %v2491_v54 = vld [vmem:[%s2266_s22 + $0x9] sm:$0x1] (%p423_p9)  ;;  %s1599_s9 = sshll.u32 (%p423_p9), %s2110_s19, 4  ;;  %s1262_s5 = sshll.u32 (%p423_p9), %s275_s11, 4  ;;  %s1263_s5 = int_to_ptr.vmem [resolvable:$true] %s1262_s5 }
 0x16f   : >> { %1692 = vmatprep.subr.mxu0 %v2060_v24  ;;  %vm459_vm10 = vcmp.eq.s32.totalorder %v439_v34, %v2393_v21  ;;  %v437_v36 = vadd.s32 %v430_v25, %v2350_v14  ;;  %v436_v37 = vadd.s32 %v430_v25, %v2356_v15  ;;  %v435_v38 = vadd.s32 %v430_v25, %v2362_v16  ;;  %s1260_s30 = scalar_lea.hbm (%p423_p9), %s3000_s4, %s1599_s9  ;;  %s1250_s22 = scalar_lea.sflag (%p423_p9), [#allocation4], %s2262_s2 }
 0x170   : >> { %1693 = vmatpush3.msk.msra.mxu0 %vm465_vm4, %v2062_v30  ;;  %vm458_vm11 = vcmp.eq.s32.totalorder %v438_v35, %v2393_v21  ;;  %v434_v39 = vadd.s32 %v430_v25, %v2368_v17  ;;  %v433_v40 = vadd.s32 %v430_v25, %v2374_v18  ;;  %v432_v41 = vadd.s32 %v430_v25, %v2380_v19  ;;  %s1956_s0 = scalar_lea.vmem (%p423_p9), %s1263_s5, 16  ;;  %p3024_p1 = scmp.ne.s32.totalorder (%p423_p9), %s3009_s27, 0 }
 0x171   : >> { %1694 = vmatprep.subr.mxu0 %v2060_v24  ;;  %vm457_vm12 = vcmp.eq.s32.totalorder %v437_v36, %v2393_v21  ;;  %vm456_vm13 = vcmp.eq.s32.totalorder %v436_v37, %v2393_v21  ;;  %vm455_vm14 = vcmp.eq.s32.totalorder %v435_v38, %v2393_v21  ;;  %v431_v42 = vadd.s32 %v430_v25, %v2293_v2  ;;  %p1957_p10 = scmp.ne.s32.totalorder (%p423_p9), %s1263_s5, %s1956_s0  ;;  %s2063_s29 = smov (%p423_p9), [#allocation10]  }
 0x172   : >> { %1695 = vmatpush3.msk.msra.mxu0 %vm464_vm5, %v2062_v30  ;;  %vm454_vm15 = vcmp.eq.s32.totalorder %v434_v39, %v2393_v21  ;;  %vm453_vm1 = vcmp.eq.s32.totalorder %v433_v40, %v2393_v21  ;;  %vm452_vm2 = vcmp.eq.s32.totalorder %v432_v41, %v2393_v21  ;;  %v596_v55 = vadd.s32 (%p423_p9), 512, %v2301_v4 }
 0x173   : >> { %1696 = vmatprep.subr.mxu0 %v2060_v24  ;;  %vm451_vm3 = vcmp.eq.s32.totalorder %v431_v42, %v2393_v21  ;;  %v599_v56 = vsub.s32 (%p423_p9), 0, %v2293_v2  ;;  %v2496_v57 = vadd.s32 (%p423_p9), 512, %v2304_v5  ;;  %v2499_v58 = vadd.s32 (%p423_p9), 512, %v2307_v6  ;;  %p1958_p5 = pnand (%p423_p9), %p1957_p10, %p3024_p1 }
 0x174   : >> { %1697 = vmatpush3.msk.msra.mxu0 %vm463_vm6, %v2062_v30  ;;  %v2502_v59 = vadd.s32 (%p423_p9), 512, %v2314_v7  ;;  %v2536_v20 = vadd.s32 (%p423_p9), 512, %v2320_v9 }
 0x175   : >> { %1698 = vmatprep.subr.mxu0 %v2060_v24  ;;  %v2505_v60 = vrot.slane (%p423_p9), %v2468_v47, %v599_v56  ;;  %v2508_v61 = vrot.slane (%p423_p9), %v2471_v48, %v599_v56  ;;  %v2511_v62 = vrot.slane (%p423_p9), %v2474_v49, %v599_v56  ;;  %v2514_v63 = vrot.slane (%p423_p9), %v2479_v50, %v599_v56  ;;  %p1959_p0 = pneg (%p423_p9), %p1958_p5 }
 0x176   : >> { %1699 = vmatpush3.msk.msra.mxu0 %vm462_vm7, %v2062_v30  ;;  %v2517_v0 = vrot.slane (%p423_p9), %v2482_v51, %v599_v56  ;;  %v2520_v3 = vrot.slane (%p423_p9), %v2485_v52, %v599_v56  ;;  %v2523_v4 = vrot.slane (%p423_p9), %v2488_v53, %v599_v56  ;;  %v2526_v5 = vrot.slane (%p423_p9), %v2491_v54, %v599_v56 }
 0x177   : >> { %1700 = vmatprep.subr.mxu0 %v2060_v24  ;;  %vm668_vm4 = vcmp.eq.s32.totalorder (%p423_p9), %v596_v55, %v2508_v61  ;;  %vm736_vm5 = vcmp.eq.s32.totalorder (%p423_p9), %v596_v55, %v2511_v62  ;;  %vm804_vm6 = vcmp.eq.s32.totalorder (%p423_p9), %v596_v55, %v2514_v63 }
 0x178   : >> { %1701 = vmatpush3.msk.msra.mxu0 %vm461_vm8, %v2062_v30  ;;  %v1494_v7 = vsel (%p423_p9), %vm668_vm4, 1.0, %v2057_v1  ;;  %v1510_v8 = vsel (%p423_p9), %vm736_vm5, 1.0, %v2057_v1  ;;  %vm872_vm7 = vcmp.eq.s32.totalorder (%p423_p9), %v596_v55, %v2517_v0  ;;  %vm940_vm8 = vcmp.eq.s32.totalorder (%p423_p9), %v596_v55, %v2520_v3 }
 0x179   : >> { %1702 = vmatprep.subr.mxu0 %v2060_v24  ;;  %v1542_v23 = vsel (%p423_p9), %vm872_vm7, 1.0, %v2057_v1  ;;  %vm666_vm4 = vcmp.eq.s32.totalorder (%p423_p9), %v2499_v58, %v2508_v61  ;;  %vm734_vm5 = vcmp.eq.s32.totalorder (%p423_p9), %v2499_v58, %v2511_v62  ;;  %vm870_vm7 = vcmp.eq.s32.totalorder (%p423_p9), %v2499_v58, %v2517_v0 }
 0x17a   : >> { %1703 = vmatpush3.msk.msra.mxu0 %vm460_vm9, %v2062_v30  ;;  %vm1008_vm9 = vcmp.eq.s32.totalorder (%p423_p9), %v596_v55, %v2523_v4  ;;  %v1492_v41 = vsel (%p423_p9), %vm666_vm4, 1.0, %v2057_v1  ;;  %vm664_vm4 = vcmp.eq.s32.totalorder (%p423_p9), %v2536_v20, %v2508_v61 }
 0x17b   : >> { %1704 = vmatprep.subr.mxu0 %v2060_v24  ;;  %v1574_v26 = vsel (%p423_p9), %vm1008_vm9, 1.0, %v2057_v1  ;;  %vm1006_vm9 = vcmp.eq.s32.totalorder (%p423_p9), %v2499_v58, %v2523_v4 }
 0x17c   : >> { %1705 = vmatpush3.msk.msra.mxu0 %vm459_vm10, %v2062_v30  ;;  %vm1076_vm10 = vcmp.eq.s32.totalorder (%p423_p9), %v596_v55, %v2526_v5 }
 0x17d   : >> { %1706 = vmatprep.subr.mxu0 %v2060_v24  ;;  %v1590_v29 = vsel (%p423_p9), %vm1076_vm10, 1.0, %v2057_v1  ;;  %vm613_vm10 = vcmp.eq.s32.totalorder (%p423_p9), %v2502_v59, %v2505_v60 }
 0x17e   : >> { %1707 = vmatpush3.msk.msra.mxu0 %vm458_vm11, %v2062_v30  ;;  %vm615_vm11 = vcmp.eq.s32.totalorder (%p423_p9), %v2496_v57, %v2505_v60 }
 0x17f   : >> { %1708 = vmatprep.subr.mxu0 %v2060_v24  ;;  %v1477_v9 = vsel (%p423_p9), %vm615_vm11, 1.0, %v2057_v1  ;;  %vm665_vm11 = vcmp.eq.s32.totalorder (%p423_p9), %v2502_v59, %v2508_v61 }
 0x180   : >> { %1709 = vmatpush3.msk.msra.mxu0 %vm457_vm12, %v2062_v30  ;;  %vm667_vm12 = vcmp.eq.s32.totalorder (%p423_p9), %v2496_v57, %v2508_v61 }
 0x181   : >> { %1710 = vmatprep.subr.mxu0 %v2060_v24  ;;  %v1493_v27 = vsel (%p423_p9), %vm667_vm12, 1.0, %v2057_v1  ;;  %vm1074_vm12 = vcmp.eq.s32.totalorder (%p423_p9), %v2499_v58, %v2526_v5 }
 0x182   : >> { %1711 = vmatpush3.msk.msra.mxu0 %vm456_vm13, %v2062_v30  ;;  %vm735_vm13 = vcmp.eq.s32.totalorder (%p423_p9), %v2496_v57, %v2511_v62 }
 0x183   : >> { %1712 = vmatprep.subr.mxu0 %v2060_v24  ;;  %v1509_v31 = vsel (%p423_p9), %vm735_vm13, 1.0, %v2057_v1  ;;  %vm733_vm13 = vcmp.eq.s32.totalorder (%p423_p9), %v2502_v59, %v2511_v62 }
 0x184   : >> { %1713 = vmatpush3.msk.msra.mxu0 %vm455_vm14, %v2062_v30  ;;  %vm803_vm14 = vcmp.eq.s32.totalorder (%p423_p9), %v2496_v57, %v2514_v63 }
 0x185   : >> { %1714 = vmatprep.subr.mxu0 %v2060_v24  ;;  %v1525_v32 = vsel (%p423_p9), %vm803_vm14, 1.0, %v2057_v1  ;;  %vm801_vm14 = vcmp.eq.s32.totalorder (%p423_p9), %v2502_v59, %v2514_v63 }
 0x186   : >> { %1715 = vmatpush3.msk.msra.mxu0 %vm454_vm15, %v2062_v30  ;;  %vm871_vm15 = vcmp.eq.s32.totalorder (%p423_p9), %v2496_v57, %v2517_v0 }
 0x187   : >> { %1716 = vmatprep.subr.mxu0 %v2060_v24  ;;  %v1541_v35 = vsel (%p423_p9), %vm871_vm15, 1.0, %v2057_v1  ;;  %vm869_vm15 = vcmp.eq.s32.totalorder (%p423_p9), %v2502_v59, %v2517_v0 }
 0x188   : >> { %1717 = vmatpush3.msk.msra.mxu0 %vm453_vm1, %v2062_v30  ;;  %vm939_vm1 = vcmp.eq.s32.totalorder (%p423_p9), %v2496_v57, %v2520_v3 }
 0x189   : >> { %1718 = vmatprep.subr.mxu0 %v2060_v24  ;;  %v1557_v36 = vsel (%p423_p9), %vm939_vm1, 1.0, %v2057_v1  ;;  %vm937_vm1 = vcmp.eq.s32.totalorder (%p423_p9), %v2502_v59, %v2520_v3 }
 0x18a   : >> { %1719 = vmatpush3.msk.msra.mxu0 %vm452_vm2, %v2062_v30  ;;  %vm1007_vm2 = vcmp.eq.s32.totalorder (%p423_p9), %v2496_v57, %v2523_v4 }
 0x18b   : >> { %1720 = vmatprep.subr.mxu0 %v2060_v24  ;;  %v1558_v24 = vsel (%p423_p9), %vm940_vm8, 1.0, %v2057_v1  ;;  %v1573_v37 = vsel (%p423_p9), %vm1007_vm2, 1.0, %v2057_v1  ;;  %vm938_vm8 = vcmp.eq.s32.totalorder (%p423_p9), %v2499_v58, %v2520_v3  ;;  %vm612_vm2 = vcmp.eq.s32.totalorder (%p423_p9), %v2536_v20, %v2505_v60 }
 0x18c   : >> { %1721 = vmatpush3.msk.msra.mxu0 %vm451_vm3, %v2062_v30  ;;  %v715_v30 = vadd.f32 (%p423_p9), %v1493_v27, %v1477_v9  ;;  %vm1075_vm3 = vcmp.eq.s32.totalorder (%p423_p9), %v2496_v57, %v2526_v5 }
 0x18d   : >> { %1723 = vmatmul.mubr.f32.vlgmr.msra.gmra.mxu0 %v1446_v43  ;;  %1725 = vmatprep.subr.mxu0 (%p423_p9), %v2057_v1  ;;  %v1589_v56 = vsel (%p423_p9), %vm1075_vm3, 1.0, %v2057_v1  ;;  %vm1005_vm3 = vcmp.eq.s32.totalorder (%p423_p9), %v2502_v59, %v2523_v4 }
 0x18e   : > { %1757 = vmatprep.mubr.msk.f32.mxu0 (%p423_p9), %vm2058_vm0, %v2057_v1  ;;  %vm616_vm0 = vcmp.eq.s32.totalorder (%p423_p9), %v596_v55, %v2505_v60  ;;  %v783_v34 = vadd.f32 (%p423_p9), %v1509_v31, %v715_v30  ;;  %v1523_v30 = vsel (%p423_p9), %vm801_vm14, 1.0, %v2057_v1 }
 0x18f   : > { %v1478_v6 = vsel (%p423_p9), %vm616_vm0, 1.0, %v2057_v1  ;;  %vm614_vm0 = vcmp.eq.s32.totalorder (%p423_p9), %v2499_v58, %v2505_v60 }
 0x190   : > { %v716_v21 = vadd.f32 (%p423_p9), %v1494_v7, %v1478_v6  ;;  %v851_v39 = vadd.f32 (%p423_p9), %v1525_v32, %v783_v34  ;;  %v1476_v40 = vsel (%p423_p9), %vm614_vm0, 1.0, %v2057_v1  ;;  %v1539_v34 = vsel (%p423_p9), %vm869_vm15, 1.0, %v2057_v1 }
 0x191   : > { %v714_v42 = vadd.f32 (%p423_p9), %v1492_v41, %v1476_v40  ;;  %vm1073_vm0 = vcmp.eq.s32.totalorder (%p423_p9), %v2502_v59, %v2526_v5  ;;  %v1490_v40 = vsel (%p423_p9), %vm664_vm4, 1.0, %v2057_v1 }
 0x192   : > { %v784_v25 = vadd.f32 (%p423_p9), %v1510_v8, %v716_v21  ;;  %v1540_v21 = vsel (%p423_p9), %vm870_vm7, 1.0, %v2057_v1  ;;  %vm868_vm7 = vcmp.eq.s32.totalorder (%p423_p9), %v2536_v20, %v2517_v0 }
 0x24d   : >> { %v568_v44 = vpop.f32.mrf.mxu0  ;;  %425 = sbr.rel (!%p423_p9) target bundleno = 360 (0x168), region = 112 }
 0x24e   : >> { %v2458_v22 = vadd.f32 %v2044_v22, %v568_v44   ;;  %v919_v44 = vadd.f32 (%p423_p9), %v1541_v35, %v851_v39  ;;  %v1555_v35 = vsel (%p423_p9), %vm937_vm1, 1.0, %v2057_v1 }
 0x24f   : >> { %v1724_v46 = vpop.f32.mrf.mxu0 }
 0x250   : >> { %v3022_v45 = vmov %v2458_v22  ;;  %v1508_v46 = vsel (%p423_p9), %vm734_vm5, 1.0, %v2057_v1  ;;  %v987_v8 = vadd.f32 (%p423_p9), %v1557_v36, %v919_v44  ;;  %vm732_vm5 = vcmp.eq.s32.totalorder (%p423_p9), %v2536_v20, %v2511_v62 }
 0x251   : >> { %v3023_v22 = vmov %v3022_v45  ;;  %v782_v6 = vadd.f32 (%p423_p9), %v1508_v46, %v714_v42  ;;  %v1506_v41 = vsel (%p423_p9), %vm732_vm5, 1.0, %v2057_v1  ;;  %v1571_v42 = vsel (%p423_p9), %vm1005_vm3, 1.0, %v2057_v1 }
 0x252   : > { %v1526_v22 = vsel %vm804_vm6, 1.0, %v2057_v1  ;;  %vm802_vm6 = vcmp.eq.s32.totalorder %v2499_v58, %v2514_v63  ;;  %v1055_v57 = vadd.f32 %v1573_v37, %v987_v8  ;;  %v1474_v58 = vsel %vm612_vm2, 1.0, %v2057_v1 }
 0x253   : > { %v852_v28 = vadd.f32 %v1526_v22, %v784_v25  ;;  %v1524_v55 = vsel %vm802_vm6, 1.0, %v2057_v1  ;;  %v1556_v22 = vsel %vm938_vm8, 1.0, %v2057_v1  ;;  %v1475_v25 = vsel %vm613_vm10, 1.0, %v2057_v1 }
 0x254   : > { %vm800_vm6 = vcmp.eq.s32.totalorder %v2536_v20, %v2514_v63  ;;  %v712_v59 = vadd.f32 %v1490_v40, %v1474_v58  ;;  %vm936_vm8 = vcmp.eq.s32.totalorder %v2536_v20, %v2520_v3  ;;  %v1587_v44 = vsel %vm1073_vm0, 1.0, %v2057_v1 }
 0x255   : > { %v920_v33 = vadd.f32 %v1542_v23, %v852_v28  ;;  %v850_v23 = vadd.f32 %v1524_v55, %v782_v6  ;;  %v1123_v28 = vadd.f32 %v1589_v56, %v1055_v57  ;;  %v1522_v46 = vsel %vm800_vm6, 1.0, %v2057_v1 }
 0x256   : > { %v780_v55 = vadd.f32 %v1506_v41, %v712_v59  ;;  %v1538_v56 = vsel %vm868_vm7, 1.0, %v2057_v1  ;;  %v1554_v6 = vsel %vm936_vm8, 1.0, %v2057_v1  ;;  %vm1072_vm10 = vcmp.eq.s32.totalorder %v2536_v20, %v2526_v5 }
 0x257   : > { %v988_v38 = vadd.f32 %v1558_v24, %v920_v33  ;;  %v1572_v24 = vsel %vm1006_vm9, 1.0, %v2057_v1  ;;  %v918_v9 = vadd.f32 %v1540_v21, %v850_v23  ;;  %v1588_v33 = vsel %vm1074_vm12, 1.0, %v2057_v1 }
 0x258   : > { %vm1004_vm9 = vcmp.eq.s32.totalorder %v2536_v20, %v2523_v4  ;;  %v848_v23 = vadd.f32 %v1522_v46, %v780_v55 }
 0x259   : > { %v1056_v43 = vadd.f32 %v1574_v26, %v988_v38  ;;  %v1491_v26 = vsel %vm665_vm11, 1.0, %v2057_v1  ;;  %v986_v31 = vadd.f32 %v1556_v22, %v918_v9  ;;  %v1570_v21 = vsel %vm1004_vm9, 1.0, %v2057_v1 }
 0x25a   : > { %v713_v27 = vadd.f32 %v1491_v26, %v1475_v25  ;;  %v2653_v22 = vadd.s32 512, %v2332_v11  ;;  %v916_v26 = vadd.f32 %v1538_v56, %v848_v23  ;;  %v1586_v11 = vsel %vm1072_vm10, 1.0, %v2057_v1 }
 0x25b   : > { %v1124_v7 = vadd.f32 %v1590_v29, %v1056_v43  ;;  %v1507_v29 = vsel %vm733_vm13, 1.0, %v2057_v1  ;;  %v1054_v36 = vadd.f32 %v1572_v24, %v986_v31 }
 0x25c   : > { %v781_v32 = vadd.f32 %v1507_v29, %v713_v27  ;;  %v589_v27 = vadd.s32 512, %v2338_v12  ;;  %vm610_vm3 = vcmp.eq.s32.totalorder %v2653_v22, %v2505_v60  ;;  %vm662_vm0 = vcmp.eq.s32.totalorder %v2653_v22, %v2508_v61 }
 0x25d   : > { %1726 = vmatpush3.msra.mxu0 %v1124_v7  ;;  %v1122_v38 = vadd.f32 %v1588_v33, %v1054_v36  ;;  %v591_v7 = vadd.s32 512, %v2326_v10  ;;  %vm730_vm4 = vcmp.eq.s32.totalorder %v2653_v22, %v2511_v62  ;;  %v1472_v33 = vsel %vm610_vm3, 1.0, %v2057_v1 }
 0x25e   : > { %1727 = vmatprep.subr.mxu0 %v2057_v1  ;;  %v849_v37 = vadd.f32 %v1523_v30, %v781_v32  ;;  %vm798_vm6 = vcmp.eq.s32.totalorder %v2653_v22, %v2514_v63  ;;  %vm866_vm7 = vcmp.eq.s32.totalorder %v2653_v22, %v2517_v0  ;;  %vm934_vm8 = vcmp.eq.s32.totalorder %v2653_v22, %v2520_v3 }
 0x25f   : > { %1728 = vmatpush3.msra.mxu0 %v1123_v28  ;;  %vm611_vm11 = vcmp.eq.s32.totalorder %v591_v7, %v2505_v60  ;;  %vm663_vm12 = vcmp.eq.s32.totalorder %v591_v7, %v2508_v61  ;;  %vm731_vm13 = vcmp.eq.s32.totalorder %v591_v7, %v2511_v62  ;;  %vm799_vm14 = vcmp.eq.s32.totalorder %v591_v7, %v2514_v63 }
 0x260   : > { %1729 = vmatprep.subr.mxu0 %v2057_v1  ;;  %v917_v39 = vadd.f32 %v1539_v34, %v849_v37  ;;  %v1473_v57 = vsel %vm611_vm11, 1.0, %v2057_v1  ;;  %v1489_v10 = vsel %vm663_vm12, 1.0, %v2057_v1  ;;  %v1505_v25 = vsel %vm731_vm13, 1.0, %v2057_v1 }
 0x261   : > { %1730 = vmatpush3.msra.mxu0 %v1122_v38  ;;  %v711_v9 = vadd.f32 %v1489_v10, %v1473_v57  ;;  %vm867_vm15 = vcmp.eq.s32.totalorder %v591_v7, %v2517_v0  ;;  %v1521_v20 = vsel %vm799_vm14, 1.0, %v2057_v1  ;;  %vm935_vm1 = vcmp.eq.s32.totalorder %v591_v7, %v2520_v3 }
 0x262   : > { %v985_v43 = vadd.f32 %v1555_v35, %v917_v39  ;;  %1731 = vmatprep.subr.mxu0 %v2057_v1  ;;  %v984_v28 = vadd.f32 %v1554_v6, %v916_v26  ;;  %v1537_v30 = vsel %vm867_vm15, 1.0, %v2057_v1  ;;  %vm1003_vm2 = vcmp.eq.s32.totalorder %v591_v7, %v2523_v4 }
 0x263   : > { %v779_v29 = vadd.f32 %v1505_v25, %v711_v9  ;;  %v1553_v31 = vsel %vm935_vm1, 1.0, %v2057_v1  ;;  %vm1071_vm5 = vcmp.eq.s32.totalorder %v591_v7, %v2526_v5  ;;  %v1488_v34 = vsel %vm662_vm0, 1.0, %v2057_v1 }
 0x264   : > { %v1053_v8 = vadd.f32 %v1571_v42, %v985_v43  ;;  %v1052_v12 = vadd.f32 %v1570_v21, %v984_v28  ;;  %v1504_v35 = vsel %vm730_vm4, 1.0, %v2057_v1  ;;  %v1569_v58 = vsel %vm1003_vm2, 1.0, %v2057_v1 }
 0x265   : > { %v847_v32 = vadd.f32 %v1521_v20, %v779_v29  ;;  %v710_v38 = vadd.f32 %v1488_v34, %v1472_v33  ;;  %v1585_v39 = vsel %vm1071_vm5, 1.0, %v2057_v1  ;;  %v1520_v40 = vsel %vm798_vm6, 1.0, %v2057_v1 }
 0x266   : > { %v1121_v24 = vadd.f32 %v1587_v44, %v1053_v8  ;;  %v1120_v36 = vadd.f32 %v1586_v11, %v1052_v12  ;;  %v1536_v41 = vsel %vm866_vm7, 1.0, %v2057_v1  ;;  %vm1002_vm9 = vcmp.eq.s32.totalorder %v2653_v22, %v2523_v4 }
 0x267   : > { %v915_v37 = vadd.f32 %v1537_v30, %v847_v32  ;;  %v778_v59 = vadd.f32 %v1504_v35, %v710_v38  ;;  %vm1070_vm10 = vcmp.eq.s32.totalorder %v2653_v22, %v2526_v5  ;;  %v1552_v43 = vsel %vm934_vm8, 1.0, %v2057_v1 }
 0x268   : > { %1732 = vmatpush3.msra.mxu0 %v1121_v24  ;;  %vm609_vm11 = vcmp.eq.s32.totalorder %v589_v27, %v2505_v60  ;;  %vm661_vm12 = vcmp.eq.s32.totalorder %v589_v27, %v2508_v61  ;;  %vm729_vm13 = vcmp.eq.s32.totalorder %v589_v27, %v2511_v62  ;;  %vm797_vm14 = vcmp.eq.s32.totalorder %v589_v27, %v2514_v63 }
 0x269   : > { %1733 = vmatprep.subr.mxu0 %v2057_v1  ;;  %v983_v42 = vadd.f32 %v1553_v31, %v915_v37  ;;  %v846_v46 = vadd.f32 %v1520_v40, %v778_v59  ;;  %v1471_v55 = vsel %vm609_vm11, 1.0, %v2057_v1  ;;  %v1487_v56 = vsel %vm661_vm12, 1.0, %v2057_v1 }
 0x26a   : > { %1734 = vmatpush3.msra.mxu0 %v1120_v36  ;;  %v709_v6 = vadd.f32 %v1487_v56, %v1471_v55  ;;  %v1503_v7 = vsel %vm729_vm13, 1.0, %v2057_v1  ;;  %vm865_vm15 = vcmp.eq.s32.totalorder %v589_v27, %v2517_v0  ;;  %v1568_v23 = vsel %vm1002_vm9, 1.0, %v2057_v1 }
 0x26b   : > { %1735 = vmatprep.subr.mxu0 %v2057_v1  ;;  %v1051_v44 = vadd.f32 %v1569_v58, %v983_v42  ;;  %v914_v21 = vadd.f32 %v1536_v41, %v846_v46  ;;  %v1519_v24 = vsel %vm797_vm14, 1.0, %v2057_v1  ;;  %vm933_vm1 = vcmp.eq.s32.totalorder %v589_v27, %v2520_v3 }
 0x26c   : > { %v777_v57 = vadd.f32 %v1503_v7, %v709_v6  ;;  %vm1001_vm2 = vcmp.eq.s32.totalorder %v589_v27, %v2523_v4  ;;  %vm1069_vm3 = vcmp.eq.s32.totalorder %v589_v27, %v2526_v5  ;;  %v1584_v25 = vsel %vm1070_vm10, 1.0, %v2057_v1 }
 0x26d   : > { %v1119_v8 = vadd.f32 %v1585_v39, %v1051_v44  ;;  %v982_v10 = vadd.f32 %v1552_v43, %v914_v21  ;;  %v1535_v26 = vsel %vm865_vm15, 1.0, %v2057_v1  ;;  %v1551_v9 = vsel %vm933_vm1, 1.0, %v2057_v1 }
 0x26e   : > { %v845_v11 = vadd.f32 %v1519_v24, %v777_v57  ;;  %v1567_v20 = vsel %vm1001_vm2, 1.0, %v2057_v1  ;;  %v1583_v28 = vsel %vm1069_vm3, 1.0, %v2057_v1  ;;  %v588_v27 = vadd.s32 512, %v2344_v13 }
 0x26f   : > { %1736 = vmatpush3.msra.mxu0 %v1119_v8  ;;  %v1050_v29 = vadd.f32 %v1568_v23, %v982_v10  ;;  %v2724_v30 = vadd.s32 512, %v2350_v14  ;;  %v2727_v22 = vadd.s32 512, %v2356_v15  ;;  %v2730_v31 = vadd.s32 512, %v2362_v16 }
 0x270   : > { %1737 = vmatprep.subr.mxu0 %v2057_v1  ;;  %v913_v12 = vadd.f32 %v1535_v26, %v845_v11  ;;  %vm608_vm0 = vcmp.eq.s32.totalorder %v588_v27, %v2505_v60  ;;  %vm660_vm4 = vcmp.eq.s32.totalorder %v588_v27, %v2508_v61  ;;  %vm728_vm5 = vcmp.eq.s32.totalorder %v588_v27, %v2511_v62 }
 0x271   : > { %v1118_v32 = vadd.f32 %v1584_v25, %v1050_v29  ;;  %v1470_v13 = vsel %vm608_vm0, 1.0, %v2057_v1  ;;  %v1486_v33 = vsel %vm660_vm4, 1.0, %v2057_v1  ;;  %v1502_v14 = vsel %vm728_vm5, 1.0, %v2057_v1 }
 0x272   : > { %v981_v34 = vadd.f32 %v1551_v9, %v913_v12  ;;  %v708_v15 = vadd.f32 %v1486_v33, %v1470_v13  ;;  %vm796_vm6 = vcmp.eq.s32.totalorder %v588_v27, %v2514_v63  ;;  %vm864_vm7 = vcmp.eq.s32.totalorder %v588_v27, %v2517_v0 }
 0x273   : > { %1738 = vmatpush3.msra.mxu0 %v1118_v32  ;;  %v1518_v16 = vsel %vm796_vm6, 1.0, %v2057_v1  ;;  %vm932_vm8 = vcmp.eq.s32.totalorder %v588_v27, %v2520_v3  ;;  %v2743_v35 = vadd.s32 512, %v2368_v17  ;;  %v2746_v36 = vadd.s32 512, %v2374_v18 }
 0x274   : > { %1739 = vmatprep.subr.mxu0 %v2057_v1  ;;  %v1049_v37 = vadd.f32 %v1567_v20, %v981_v34  ;;  %v776_v58 = vadd.f32 %v1502_v14, %v708_v15  ;;  %v1534_v38 = vsel %vm864_vm7, 1.0, %v2057_v1  ;;  %vm1000_vm9 = vcmp.eq.s32.totalorder %v588_v27, %v2523_v4 }
 0x275   : > { %vm1068_vm10 = vcmp.eq.s32.totalorder %v588_v27, %v2526_v5  ;;  %vm607_vm11 = vcmp.eq.s32.totalorder %v2724_v30, %v2505_v60  ;;  %vm659_vm12 = vcmp.eq.s32.totalorder %v2724_v30, %v2508_v61  ;;  %vm727_vm13 = vcmp.eq.s32.totalorder %v2724_v30, %v2511_v62 }
 0x276   : > { %v1117_v17 = vadd.f32 %v1583_v28, %v1049_v37  ;;  %v844_v18 = vadd.f32 %v1518_v16, %v776_v58  ;;  %v1550_v39 = vsel %vm932_vm8, 1.0, %v2057_v1  ;;  %v1469_v40 = vsel %vm607_vm11, 1.0, %v2057_v1 }
 0x277   : > { %v1485_v41 = vsel %vm659_vm12, 1.0, %v2057_v1  ;;  %v1501_v42 = vsel %vm727_vm13, 1.0, %v2057_v1  ;;  %vm795_vm14 = vcmp.eq.s32.totalorder %v2724_v30, %v2514_v63  ;;  %vm863_vm15 = vcmp.eq.s32.totalorder %v2724_v30, %v2517_v0 }
 0x278   : > { %1740 = vmatpush3.msra.mxu0 %v1117_v17  ;;  %v912_v59 = vadd.f32 %v1534_v38, %v844_v18  ;;  %v1566_v43 = vsel %vm1000_vm9, 1.0, %v2057_v1  ;;  %v1582_v44 = vsel %vm1068_vm10, 1.0, %v2057_v1  ;;  %v707_v46 = vadd.f32 %v1485_v41, %v1469_v40 }
 0x279   : > { %1741 = vmatprep.subr.mxu0 %v2057_v1  ;;  %v1517_v55 = vsel %vm795_vm14, 1.0, %v2057_v1  ;;  %v1533_v56 = vsel %vm863_vm15, 1.0, %v2057_v1  ;;  %vm931_vm1 = vcmp.eq.s32.totalorder %v2724_v30, %v2520_v3  ;;  %vm606_vm2 = vcmp.eq.s32.totalorder %v2727_v22, %v2505_v60 }
 0x27a   : > { %v980_v6 = vadd.f32 %v1550_v39, %v912_v59  ;;  %v775_v7 = vadd.f32 %v1501_v42, %v707_v46  ;;  %vm999_vm3 = vcmp.eq.s32.totalorder %v2724_v30, %v2523_v4  ;;  %vm1067_vm0 = vcmp.eq.s32.totalorder %v2724_v30, %v2526_v5 }
 0x27b   : > { %v1549_v8 = vsel %vm931_vm1, 1.0, %v2057_v1  ;;  %v1468_v21 = vsel %vm606_vm2, 1.0, %v2057_v1  ;;  %vm658_vm4 = vcmp.eq.s32.totalorder %v2727_v22, %v2508_v61  ;;  %vm726_vm5 = vcmp.eq.s32.totalorder %v2727_v22, %v2511_v62 }
 0x27c   : > { %v1048_v23 = vadd.f32 %v1566_v43, %v980_v6  ;;  %v843_v24 = vadd.f32 %v1517_v55, %v775_v7  ;;  %v1484_v57 = vsel %vm658_vm4, 1.0, %v2057_v1  ;;  %v1500_v10 = vsel %vm726_vm5, 1.0, %v2057_v1 }
 0x27d   : > { %v706_v25 = vadd.f32 %v1484_v57, %v1468_v21  ;;  %vm794_vm6 = vcmp.eq.s32.totalorder %v2727_v22, %v2514_v63  ;;  %vm862_vm7 = vcmp.eq.s32.totalorder %v2727_v22, %v2517_v0  ;;  %vm930_vm8 = vcmp.eq.s32.totalorder %v2727_v22, %v2520_v3 }
 0x27e   : > { %v1116_v26 = vadd.f32 %v1582_v44, %v1048_v23  ;;  %v911_v9 = vadd.f32 %v1533_v56, %v843_v24  ;;  %v1565_v11 = vsel %vm999_vm3, 1.0, %v2057_v1  ;;  %v1516_v20 = vsel %vm794_vm6, 1.0, %v2057_v1 }
 0x27f   : > { %v1581_v28 = vsel %vm1067_vm0, 1.0, %v2057_v1  ;;  %v774_v27 = vadd.f32 %v1500_v10, %v706_v25  ;;  %v1532_v29 = vsel %vm862_vm7, 1.0, %v2057_v1  ;;  %v1548_v12 = vsel %vm930_vm8, 1.0, %v2057_v1 }
 0x280   : > { %1742 = vmatpush3.msra.mxu0 %v1116_v26  ;;  %v979_v32 = vadd.f32 %v1549_v8, %v911_v9  ;;  %vm998_vm9 = vcmp.eq.s32.totalorder %v2727_v22, %v2523_v4  ;;  %vm1066_vm10 = vcmp.eq.s32.totalorder %v2727_v22, %v2526_v5  ;;  %vm605_vm11 = vcmp.eq.s32.totalorder %v2730_v31, %v2505_v60 }
 0x281   : > { %1743 = vmatprep.subr.mxu0 %v2057_v1  ;;  %v842_v30 = vadd.f32 %v1516_v20, %v774_v27  ;;  %v1467_v13 = vsel %vm605_vm11, 1.0, %v2057_v1  ;;  %vm657_vm12 = vcmp.eq.s32.totalorder %v2730_v31, %v2508_v61  ;;  %vm725_vm13 = vcmp.eq.s32.totalorder %v2730_v31, %v2511_v62 }
 0x282   : > { %v1047_v33 = vadd.f32 %v1565_v11, %v979_v32  ;;  %v1483_v14 = vsel %vm657_vm12, 1.0, %v2057_v1  ;;  %v1499_v34 = vsel %vm725_vm13, 1.0, %v2057_v1  ;;  %vm793_vm14 = vcmp.eq.s32.totalorder %v2730_v31, %v2514_v63 }
 0x283   : > { %v910_v15 = vadd.f32 %v1532_v29, %v842_v30  ;;  %v1564_v16 = vsel %vm998_vm9, 1.0, %v2057_v1  ;;  %v705_v37 = vadd.f32 %v1483_v14, %v1467_v13  ;;  %vm861_vm15 = vcmp.eq.s32.totalorder %v2730_v31, %v2517_v0 }
 0x284   : > { %v1115_v58 = vadd.f32 %v1581_v28, %v1047_v33  ;;  %v1580_v38 = vsel %vm1066_vm10, 1.0, %v2057_v1  ;;  %v1515_v17 = vsel %vm793_vm14, 1.0, %v2057_v1  ;;  %vm929_vm1 = vcmp.eq.s32.totalorder %v2730_v31, %v2520_v3 }
 0x285   : > { %v978_v18 = vadd.f32 %v1548_v12, %v910_v15  ;;  %v773_v39 = vadd.f32 %v1499_v34, %v705_v37  ;;  %v1531_v40 = vsel %vm861_vm15, 1.0, %v2057_v1  ;;  %vm997_vm2 = vcmp.eq.s32.totalorder %v2730_v31, %v2523_v4 }
 0x286   : > { %1744 = vmatpush3.msra.mxu0 %v1115_v58  ;;  %v1547_v41 = vsel %vm929_vm1, 1.0, %v2057_v1  ;;  %vm604_vm3 = vcmp.eq.s32.totalorder %v2743_v35, %v2505_v60  ;;  %vm656_vm0 = vcmp.eq.s32.totalorder %v2743_v35, %v2508_v61  ;;  %vm724_vm4 = vcmp.eq.s32.totalorder %v2743_v35, %v2511_v62 }
 0x287   : > { %1745 = vmatprep.subr.mxu0 %v2057_v1  ;;  %v1046_v22 = vadd.f32 %v1564_v16, %v978_v18  ;;  %v841_v42 = vadd.f32 %v1515_v17, %v773_v39  ;;  %vm1065_vm5 = vcmp.eq.s32.totalorder %v2730_v31, %v2526_v5  ;;  %v1466_v59 = vsel %vm604_vm3, 1.0, %v2057_v1 }
 0x288   : > { %v1482_v43 = vsel %vm656_vm0, 1.0, %v2057_v1  ;;  %v1498_v44 = vsel %vm724_vm4, 1.0, %v2057_v1  ;;  %vm792_vm6 = vcmp.eq.s32.totalorder %v2743_v35, %v2514_v63  ;;  %vm860_vm7 = vcmp.eq.s32.totalorder %v2743_v35, %v2517_v0 }
 0x289   : > { %v1114_v46 = vadd.f32 %v1580_v38, %v1046_v22  ;;  %v909_v55 = vadd.f32 %v1531_v40, %v841_v42  ;;  %v704_v56 = vadd.f32 %v1482_v43, %v1466_v59  ;;  %v1563_v6 = vsel %vm997_vm2, 1.0, %v2057_v1 }
 0x28a   : > { %v1579_v7 = vsel %vm1065_vm5, 1.0, %v2057_v1  ;;  %v1514_v8 = vsel %vm792_vm6, 1.0, %v2057_v1  ;;  %vm928_vm8 = vcmp.eq.s32.totalorder %v2743_v35, %v2520_v3  ;;  %v1530_v24 = vsel %vm860_vm7, 1.0, %v2057_v1 }
 0x28b   : > { %1746 = vmatpush3.msra.mxu0 %v1114_v46  ;;  %v977_v21 = vadd.f32 %v1547_v41, %v909_v55  ;;  %v772_v23 = vadd.f32 %v1498_v44, %v704_v56  ;;  %vm996_vm9 = vcmp.eq.s32.totalorder %v2743_v35, %v2523_v4  ;;  %v1546_v31 = vsel %vm928_vm8, 1.0, %v2057_v1 }
 0x28c   : > { %1747 = vmatprep.subr.mxu0 %v2057_v1  ;;  %vm603_vm10 = vcmp.eq.s32.totalorder %v2746_v36, %v2505_v60  ;;  %vm655_vm11 = vcmp.eq.s32.totalorder %v2746_v36, %v2508_v61  ;;  %vm723_vm12 = vcmp.eq.s32.totalorder %v2746_v36, %v2511_v62  ;;  %vm791_vm13 = vcmp.eq.s32.totalorder %v2746_v36, %v2514_v63 }
 0x28d   : > { %v1045_v57 = vadd.f32 %v1563_v6, %v977_v21  ;;  %v840_v10 = vadd.f32 %v1514_v8, %v772_v23  ;;  %v1465_v25 = vsel %vm603_vm10, 1.0, %v2057_v1  ;;  %v1481_v26 = vsel %vm655_vm11, 1.0, %v2057_v1 }
 0x28e   : > { %v703_v9 = vadd.f32 %v1481_v26, %v1465_v25  ;;  %v1497_v11 = vsel %vm723_vm12, 1.0, %v2057_v1  ;;  %vm859_vm14 = vcmp.eq.s32.totalorder %v2746_v36, %v2517_v0  ;;  %vm1064_vm15 = vcmp.eq.s32.totalorder %v2743_v35, %v2526_v5 }
 0x28f   : > { %v1113_v20 = vadd.f32 %v1579_v7, %v1045_v57  ;;  %v908_v28 = vadd.f32 %v1530_v24, %v840_v10  ;;  %v1513_v27 = vsel %vm791_vm13, 1.0, %v2057_v1  ;;  %v1562_v29 = vsel %vm996_vm9, 1.0, %v2057_v1 }
 0x290   : > { %v771_v12 = vadd.f32 %v1497_v11, %v703_v9  ;;  %vm927_vm1 = vcmp.eq.s32.totalorder %v2746_v36, %v2520_v3  ;;  %vm995_vm2 = vcmp.eq.s32.totalorder %v2746_v36, %v2523_v4  ;;  %v1529_v30 = vsel %vm859_vm14, 1.0, %v2057_v1  ;;  %v1126_v9 = vld [vmem:[#allocation8 + $0x20] sm:$0xff] }
 0x291   : > { %1748 = vmatpush3.msra.mxu0 %v1113_v20  ;;  %v976_v32 = vadd.f32 %v1546_v31, %v908_v28  ;;  %v1578_v13 = vsel %vm1064_vm15, 1.0, %v2057_v1  ;;  %vm1063_vm3 = vcmp.eq.s32.totalorder %v2746_v36, %v2526_v5  ;;  %v582_v35 = vadd.s32 512, %v2380_v19 }
 0x292   : > { %1749 = vmatprep.subr.mxu0 %v2057_v1  ;;  %v839_v33 = vadd.f32 %v1513_v27, %v771_v12  ;;  %v1545_v34 = vsel %vm927_vm1, 1.0, %v2057_v1  ;;  %v1561_v15 = vsel %vm995_vm2, 1.0, %v2057_v1  ;;  %v581_v16 = vadd.s32 512, %v2293_v2 }
 0x293   : > { %v1044_v14 = vadd.f32 %v1562_v29, %v976_v32  ;;  %vm602_vm0 = vcmp.eq.s32.totalorder %v582_v35, %v2505_v60  ;;  %vm654_vm4 = vcmp.eq.s32.totalorder %v582_v35, %v2508_v61  ;;  %vm722_vm5 = vcmp.eq.s32.totalorder %v582_v35, %v2511_v62 }
 0x294   : > { %v907_v37 = vadd.f32 %v1529_v30, %v839_v33  ;;  %v1464_v38 = vsel %vm602_vm0, 1.0, %v2057_v1  ;;  %v1480_v17 = vsel %vm654_vm4, 1.0, %v2057_v1  ;;  %v1496_v19 = vsel %vm722_vm5, 1.0, %v2057_v1  ;;  %v1236_v33 = vld [vmem:[%s239_s20] sm:$0x1]  ;;  %s1960_s20 = sshll.u32 %s2063_s29, 4  ;;  %s1961_s20 = int_to_ptr.vmem [resolvable:$false] %s1960_s20 }
 0x295   : > { %v1112_v58 = vadd.f32 %v1578_v13, %v1044_v14  ;;  %v702_v39 = vadd.f32 %v1480_v17, %v1464_v38  ;;  %vm790_vm6 = vcmp.eq.s32.totalorder %v582_v35, %v2514_v63  ;;  %vm858_vm7 = vcmp.eq.s32.totalorder %v582_v35, %v2517_v0  ;;  %s1962_s19 = scalar_lea.vmem %s1961_s20, 32  ;;  %p1963_p7 = scmp.lt.s32.totalorder %s1263_s5, %s1961_s20 }
 0x296   : > { %v975_v18 = vadd.f32 %v1545_v34, %v907_v37  ;;  %v1577_v2 = vsel %vm1063_vm3, 1.0, %v2057_v1  ;;  %v1512_v40 = vsel %vm790_vm6, 1.0, %v2057_v1  ;;  %vm926_vm8 = vcmp.eq.s32.totalorder %v582_v35, %v2520_v3  ;;  %p1964_p6 = scmp.lt.s32.totalorder %s1962_s19, %s1956_s0 }
 0x297   : > { %1750 = vmatpush3.msra.mxu0 %v1112_v58  ;;  %v770_v22 = vadd.f32 %v1496_v19, %v702_v39  ;;  %v1528_v42 = vsel %vm858_vm7, 1.0, %v2057_v1  ;;  %vm601_vm9 = vcmp.eq.s32.totalorder %v581_v16, %v2505_v60  ;;  %vm653_vm10 = vcmp.eq.s32.totalorder %v581_v16, %v2508_v61 }
 0x298   : > { %1751 = vmatprep.subr.mxu0 %v2057_v1  ;;  %v1043_v41 = vadd.f32 %v1561_v15, %v975_v18  ;;  %vm721_vm11 = vcmp.eq.s32.totalorder %v581_v16, %v2511_v62  ;;  %vm994_vm12 = vcmp.eq.s32.totalorder %v582_v35, %v2523_v4  ;;  %v1463_v36 = vsel %vm601_vm9, 1.0, %v2057_v1  ;;  %p1965_p3 = por %p1964_p6, %p1963_p7 }
 0x299   : > { %v838_v43 = vadd.f32 %v1512_v40, %v770_v22  ;;  %v1544_v44 = vsel %vm926_vm8, 1.0, %v2057_v1  ;;  %v1479_v46 = vsel %vm653_vm10, 1.0, %v2057_v1  ;;  %v1495_v55 = vsel %vm721_vm11, 1.0, %v2057_v1 }
 0x29a   : > { %v1111_v59 = vadd.f32 %v1577_v2, %v1043_v41  ;;  %vm789_vm13 = vcmp.eq.s32.totalorder %v581_v16, %v2514_v63  ;;  %vm1062_vm14 = vcmp.eq.s32.totalorder %v582_v35, %v2526_v5  ;;  %v701_v61 = vadd.f32 %v1479_v46, %v1463_v36  ;;  %p1966_p4 = pnand %p1965_p3, %p1959_p0 }
 0x29b   : > { %v906_v60 = vadd.f32 %v1528_v42, %v838_v43  ;;  %vm857_vm15 = vcmp.eq.s32.totalorder %v581_v16, %v2517_v0  ;;  %v1560_v62 = vsel %vm994_vm12, 1.0, %v2057_v1  ;;  %v1511_v56 = vsel %vm789_vm13, 1.0, %v2057_v1 }
 0x29c   : > { %1752 = vmatpush3.msra.mxu0 %v1111_v59  ;;  %v769_v7 = vadd.f32 %v1495_v55, %v701_v61  ;;  %vm925_vm1 = vcmp.eq.s32.totalorder %v581_v16, %v2520_v3  ;;  %v1576_v8 = vsel %vm1062_vm14, 1.0, %v2057_v1  ;;  %v1527_v63 = vsel %vm857_vm15, 1.0, %v2057_v1 }
 0x29d   : > { %1753 = vmatprep.subr.mxu0 %v2057_v1  ;;  %v974_v6 = vadd.f32 %v1544_v44, %v906_v60  ;;  %vm993_vm2 = vcmp.eq.s32.totalorder %v581_v16, %v2523_v4  ;;  %v1543_v0 = vsel %vm925_vm1, 1.0, %v2057_v1  ;;  %vm1061_vm3 = vcmp.eq.s32.totalorder %v581_v16, %v2526_v5 }
 0x29e   : > { %v837_v23 = vadd.f32 %v1511_v56, %v769_v7  ;;  %v1559_v57 = vsel %vm993_vm2, 1.0, %v2057_v1  ;;  %v1575_v3 = vsel %vm1061_vm3, 1.0, %v2057_v1  ;;  %vm1198_vm0 = vcmp.gt.s32.totalorder %v2468_v47, 512 }
 0x29f   : > { %v1042_v21 = vadd.f32 %v1560_v62, %v974_v6  ;;  %vm1202_vm4 = vcmp.gt.s32.totalorder %v2471_v48, 512  ;;  %v1591_v4 = vsel %vm1198_vm0, 1.0, %v2057_v1  ;;  %vm1206_vm5 = vcmp.gt.s32.totalorder %v2474_v49, 512 }
 0x2a0   : > { %v905_v31 = vadd.f32 %v1527_v63, %v837_v23  ;;  %v1592_v5 = vsel %vm1202_vm4, 1.0, %v2057_v1  ;;  %v1593_v20 = vsel %vm1206_vm5, 1.0, %v2057_v1  ;;  %vm1210_vm6 = vcmp.gt.s32.totalorder %v2479_v50, 512 }
 0x2a1   : > { %v1110_v24 = vadd.f32 %v1576_v8, %v1042_v21  ;;  %v1205_v11 = vadd.f32 %v1592_v5, %v1591_v4  ;;  %v1594_v27 = vsel %vm1210_vm6, 1.0, %v2057_v1  ;;  %vm1214_vm7 = vcmp.gt.s32.totalorder %v2482_v51, 512 }
 0x2a2   : > { %v973_v10 = vadd.f32 %v1543_v0, %v905_v31  ;;  %v1595_v48 = vsel %vm1214_vm7, 1.0, %v2057_v1  ;;  %vm1218_vm8 = vcmp.gt.s32.totalorder %v2485_v52, 512  ;;  %vm1222_vm9 = vcmp.gt.s32.totalorder %v2488_v53, 512 }
 0x2a3   : > { %1754 = vmatpush3.msra.mxu0 %v1110_v24  ;;  %v1209_v28 = vadd.f32 %v1593_v20, %v1205_v11  ;;  %v1596_v49 = vsel %vm1218_vm8, 1.0, %v2057_v1  ;;  %v1597_v50 = vsel %vm1222_vm9, 1.0, %v2057_v1  ;;  %vm1226_vm10 = vcmp.gt.s32.totalorder %v2491_v54, 512 }
 0x2a4   : > { %1755 = vmatprep.subr.mxu0 %v2057_v1  ;;  %v1041_v25 = vadd.f32 %v1559_v57, %v973_v10  ;;  %v1598_v51 = vsel %vm1226_vm10, 1.0, %v2057_v1  ;;  %v1237_v35 = vstv %s2286_s6  ;;  %v1239_v15 = vstv %s2288_s23 }
 0x2a5   : > { %v1213_v47 = vadd.f32 %v1594_v27, %v1209_v28  ;;  %v1238_v54 = vmul.f32 %v1237_v35, %v1236_v33  ;;  %v1246_v17 = vstv %s2291_s26 }
 0x2a6   : > { %v1109_v26 = vadd.f32 %v1575_v3, %v1041_v25 }
 0x2a7   : > { %v1217_v29 = vadd.f32 %v1595_v48, %v1213_v47  ;;  %v1240_v37 = vadd.f32 %v1239_v15, %v1238_v54 }
 0x2a8   : > { %1756 = vmatpush3.msra.mxu0 %v1109_v26 }
 0x2a9   : > { %1758 = vmatmul.mubr.f32.vlgmr.msra.gmra.mxu0 %v1126_v9  ;;  %v1221_v12 = vadd.f32 %v1596_v49, %v1217_v29 }
 0x2ab   : > { %v1225_v32 = vadd.f32 %v1597_v50, %v1221_v12 }
 0x2ad   : > { %v1229_v30 = vadd.f32 %v1598_v51, %v1225_v32 }
 0x2af   : > { %v1230_v13 = vmax.f32 %v1229_v30, 1.0 }
 0x2b1   : > { %1857 = vrcp.f32 %v1230_v13 }
 0x2be   : > { %v1858_v52 = vpop.eup %1857 }
 0x2bf   : > { %v1233_v53 = vrot.slane %v1858_v52, 7 }
 0x369   : > { %v1193_v14 = vpop.f32.mrf.mxu0 }
 0x36a   : > { %v1197_v34 = vadd.f32 %v1193_v14, %v3022_v45 }
 0x36b   : > { %v1759_v16 = vpop.f32.mrf.mxu0 }
 0x36c   : > { %v1235_v1 = vmul.f32 %v1233_v53, %v1197_v34 }
 0x36e   : > { %v1242_v58 = vrot.slane %v1235_v1, 1 }
 0x370   : > { %v1244_v38 = vadd.f32 %v1242_v58, %v1197_v34 }
 0x372   : > { %v1245_v19 = vadd.f32 %v1244_v38, %v1240_v37 }
 0x374   : > { %v1247_v18 = vadd.f32 %v1246_v17, %v1245_v19 }
 0x376   : > { %1248 = vst [vmem:[%s275_s11] sm:$0x1] %v1247_v18 }
 0x377   : > { %1969 = shalt.err (!%p1966_p4)
}
 0x378   : > { %s1970_s6 = scalar_lea.hbm %s1260_s30, 16  ;;  %s1974_s26 = scalar_lea.hbm %s3000_s4, 32 }
 0x379   : > { %p1971_p2 = scmp.ne.s32.totalorder %s1260_s30, %s1970_s6  ;;  %p1975_p11 = scmp.lt.s32.totalorder %s1260_s30, %s3000_s4 }
 0x37a   : > { %p1976_p12 = scmp.lt.s32.totalorder %s1974_s26, %s1970_s6 }
 0x37b   : > { %p1972_p13 = pnand %p1971_p2, %p3024_p1 }
 0x37c   : > { %p1977_p9 = por %p1976_p12, %p1975_p11 }
 0x37d   : > { %p1973_p8 = pneg %p1972_p13 }
 0x37f   : > { %p1978_p10 = pnand %p1977_p9, %p1973_p8 }
 0x381   : > { %1981 = shalt.err (!%p1978_p10)
}
 0x382   : > { %1772 = dma.vmem_to_hbm [thread:$0]  (%p3024_p1), %s1263_s5, 16, %s1260_s30, %s1250_s22  }
 0x383 PF: > { %s1274_s10 = sand.u32 1, %s2028_s15   ;;  %p3025_p5 = scmp.ne.s32.totalorder %s3010_s28, 0 }
 0x384   : > { %p3026_p0 = scmp.ge.s32.totalorder %s2040_s18, 2  ;;  %s1275_s13 = scalar_lea.sflag [#allocation4], %s1274_s10 }
 0x386   : > { %p1789_p7 = pnand %p3026_p0, %p3025_p5 }
 0x388   : > { %p1790_p6 = pneg %p1789_p7 }
 0x38a   : > { %2023 = dma.done.wait (%p1790_p6), %s1275_s13, 16  }
 0x38b   : > { %2025 = vsyncadd (%p1790_p6), %s1275_s13, 4294967280  ;;  %p21_p3 = scmp.ge.s32.totalorder %s2114_s21, 4   ;;  %s3027_s15 = smov %s2032_s16 }
 0x38c   : > { %s3028_s16 = smov %s2036_s17  ;;  %s3029_s17 = smov %s2126_s24 }
 0x38d   : > { %s3030_s18 = smov %s2114_s21  ;;  %23 = sbr.rel (!%p21_p3) target bundleno = 11 (0xb), region = 123 }
 0x392   :  { %1279 = vsyncpa [#allocation3], 1 }
 0x393   :  { %1281 = vsyncpa [#allocation3 + $0x1], 1 }
 0x394   :  { %1282 = vsyncpa [#allocation7], 1 }
 0x395   :  { %1284 = vsyncpa [#allocation7 + $0x1], 1 }
 0x396   :  { %1285 = vsyncpa [#allocation4], 1 }
 0x397   :  { %1287 = vsyncpa [#allocation4 + $0x1], 1 }
 0x398   :  { %1288 = vsyncpa [#allocation5], 1 }
 0x399   :  { %1290 = vsyncpa [#allocation5 + $0x1], 1 }

</bundles_post_ra>
